<compile_context>
chip_gen: v7x
topology: tpu7x:2x2x1
jax: 0.10.0
libtpu: 0.0.40
codegen_flags: <defaults>
</compile_context>

<pallas_src>
import functools

import jax
import jax.numpy as jnp
from jax.experimental import pallas as pl
from jax.experimental.pallas import tpu as pltpu

LATENT_LEN = 2048
NUM_INGRE = 353
H_PAD = 384  # 3 * 128: lane-dense MXU tiles / unmasked output stores


def _round_up(x, m):
    return (x + m - 1) // m * m


def decoder_t_kernel(y_ref, w3_ref, b3_ref, w4_ref, b4_ref, o_ref):
    # Layer 1: relu(y @ W3^T + b3) -- bf16 MXU matmul, f32 accumulation.
    h = jnp.dot(y_ref[...], w3_ref[...], preferred_element_type=jnp.float32)
    h = jnp.maximum(h + b3_ref[...], 0.0)                # bias + ReLU in f32 (VPU)
    # Layer 2: sigmoid(h @ W4^T + b4) -- cast h to bf16 so the MXU runs full rate.
    z = jnp.dot(h.astype(w4_ref.dtype), w4_ref[...],
                preferred_element_type=jnp.float32)
    z = z + b4_ref[...]
    o_ref[...] = jax.nn.sigmoid(z).astype(o_ref.dtype)   # sigmoid in f32 (EUP)


def prepare_params(w3, b3, w4, b4, weight_dtype=jnp.bfloat16):
    """One-time weight prep. Call ONCE (outside the per-step forward).

    - transpose to (in_features, out_features) so the kernel runs plain matmuls
    - zero-pad the 353 feature dim to 384 (3x128); padded h columns are
      relu(0 + 0) = 0 and the padded w4 rows are 0, so they cannot contaminate
      layer 2
    - cast weights to bf16 (halves weight HBM traffic); biases stay f32
    """
    H = w3.shape[0]
    pad = H_PAD - H
    w3_t = jnp.pad(jnp.transpose(w3), ((0, 0), (0, pad))).astype(weight_dtype)
    b3_p = jnp.pad(b3, (0, pad)).reshape(1, H_PAD).astype(jnp.float32)
    w4_t = jnp.pad(jnp.transpose(w4), ((0, pad), (0, pad))).astype(weight_dtype)
    b4_p = jnp.pad(b4, (0, pad)).reshape(1, H_PAD).astype(jnp.float32)
    return w3_t, b3_p, w4_t, b4_p


@functools.partial(jax.jit, static_argnames=("tm",))
def decoder_t_forward(y, w3_t, b3_p, w4_t, b4_p, *, tm=512):
    """y: (B, 2048) f32 or bf16; params from prepare_params(). Returns (B, 353) f32."""
    B, D = y.shape
    Hp = w3_t.shape[1]

    # Feed the kernel bf16 activations (no-op if the producer already emits bf16,
    # which is the preferred path: it avoids streaming the f32 copy at all).
    if y.dtype != jnp.bfloat16:
        y = y.astype(jnp.bfloat16)

    # Batch tiling without padding the array: grid = cdiv(B, tm_eff); Pallas masks
    # the ragged last block (its garbage rows feed only discarded output rows).
    # Keep >= 2 grid steps when B > 8 so both v7x TensorCores get work.
    if B <= 8:
        tm_eff = B                                # single block == full dim
    else:
        half = _round_up((B + 1) // 2, 8)         # split batch across 2 TCs
        tm_eff = max(8, min(tm, half))            # multiple of 8
    grid = (pl.cdiv(B, tm_eff),)

    flops = 2 * B * (D * Hp + Hp * Hp)
    bytes_accessed = (
        w3_t.size * w3_t.dtype.itemsize
        + w4_t.size * w4_t.dtype.itemsize
        + (b3_p.size + b4_p.size) * 4
        + B * D * 2          # bf16 activation stream
        + B * Hp * 4         # f32 output writeback
    )

    out = pl.pallas_call(
        decoder_t_kernel,
        out_shape=jax.ShapeDtypeStruct((B, Hp), jnp.float32),
        grid_spec=pltpu.PrefetchScalarGridSpec(
            num_scalar_prefetch=0,
            grid=grid,
            in_specs=[
                pl.BlockSpec((tm_eff, D), lambda i: (i, 0)),   # y: tiled over batch
                pl.BlockSpec((D, Hp), lambda i: (0, 0)),        # w3: VMEM-resident
                pl.BlockSpec((1, Hp), lambda i: (0, 0)),        # b3
                pl.BlockSpec((Hp, Hp), lambda i: (0, 0)),       # w4: VMEM-resident
                pl.BlockSpec((1, Hp), lambda i: (0, 0)),        # b4
            ],
            out_specs=pl.BlockSpec((tm_eff, Hp), lambda i: (i, 0)),
        ),
        compiler_params=pltpu.CompilerParams(
            dimension_semantics=("parallel",),
            vmem_limit_bytes=32 * 1024 * 1024,
        ),
        cost_estimate=pl.CostEstimate(
            flops=flops,
            transcendentals=2 * B * Hp,       # sigmoid ~ exp + reciprocal
            bytes_accessed=bytes_accessed,
        ),
    )(y, w3_t, b3_p, w4_t, b4_p)

    # TODO(synk): consumers that can read the padded (B, 384) slab (optionally in
    # bf16) directly avoid this extra non-lane-dense HBM copy; for tiny decode
    # batches, prefetch w3/w4 cross-call (P10) or fuse into the producer of y.
    return out[:, :NUM_INGRE]


def init_params(key, latent_len=LATENT_LEN, num_ingre=NUM_INGRE):
    # Deterministic init mimicking PyTorch nn.Linear default:
    # U(-1/sqrt(fan_in), 1/sqrt(fan_in)) for both weight and bias.
    k3w, k3b, k4w, k4b = jax.random.split(key, 4)
    bound3 = 1.0 / jnp.sqrt(latent_len)
    bound4 = 1.0 / jnp.sqrt(num_ingre)
    w3 = jax.random.uniform(k3w, (num_ingre, latent_len), jnp.float32, -bound3, bound3)
    b3 = jax.random.uniform(k3b, (num_ingre,), jnp.float32, -bound3, bound3)
    w4 = jax.random.uniform(k4w, (num_ingre, num_ingre), jnp.float32, -bound4, bound4)
    b4 = jax.random.uniform(k4b, (num_ingre,), jnp.float32, -bound4, bound4)
    return w3, b3, w4, b4


def reference_forward(y, w3, b3, w4, b4):
    h = jnp.maximum(y @ w3.T + b3, 0.0)
    return jax.nn.sigmoid(h @ w4.T + b4)


def reference_forward_bf16(y, w3_t, b3, w4_t, b4):
    # Matched reference: same bf16 activation/weight quantization as the kernel.
    w3f = w3_t[:, :NUM_INGRE].astype(jnp.float32)
    w4f = w4_t[:NUM_INGRE, :NUM_INGRE].astype(jnp.float32)
    yq = y.astype(jnp.bfloat16).astype(jnp.float32)
    h = jnp.maximum(yq @ w3f + b3, 0.0)
    hq = h.astype(jnp.bfloat16).astype(jnp.float32)
    return jax.nn.sigmoid(hq @ w4f + b4)


if __name__ == "__main__":
    key = jax.random.PRNGKey(0)
    ky, ky2, ky3, kp = jax.random.split(key, 4)

    w3, b3, w4, b4 = init_params(kp)
    # One-time weight prep (outside the hot path).
    params = prepare_params(w3, b3, w4, b4)

    # Small batch (B <= 8 path: single block equal to the full batch dim).
    batch = 2
    y = jax.random.normal(ky, (batch, LATENT_LEN), jnp.float32)
    out = jax.block_until_ready(decoder_t_forward(y, *params))
    assert out.shape == (batch, NUM_INGRE)

    ref_f32 = reference_forward(y, w3, b3, w4, b4)
    assert jnp.allclose(out, ref_f32, atol=2e-2, rtol=0.0), \
        float(jnp.max(jnp.abs(out - ref_f32)))

    ref_bf16 = reference_forward_bf16(y, params[0], b3, params[2], b4)
    assert jnp.allclose(out, ref_bf16, atol=2e-3, rtol=0.0), \
        float(jnp.max(jnp.abs(out - ref_bf16)))

    # Ragged batch (B % 8 != 0): no whole-array pad, Pallas masks the last block;
    # grid has 2 steps (v7x dual-TC path).
    y_ragged = jax.random.normal(ky2, (100, LATENT_LEN), jnp.float32)
    out_ragged = jax.block_until_ready(decoder_t_forward(y_ragged, *params))
    ref_ragged = reference_forward(y_ragged, w3, b3, w4, b4)
    assert out_ragged.shape == (100, NUM_INGRE)
    assert jnp.allclose(out_ragged, ref_ragged, atol=2e-2, rtol=0.0), \
        float(jnp.max(jnp.abs(out_ragged - ref_ragged)))

    # Multi-step grid with explicit small tile; bf16 input exercises the
    # zero-extra-cast producer path.
    y_big = jax.random.normal(ky3, (96, LATENT_LEN), jnp.float32)
    out_big = jax.block_until_ready(
        decoder_t_forward(y_big.astype(jnp.bfloat16), *params, tm=32))
    ref_big = reference_forward(y_big, w3, b3, w4, b4)
    assert out_big.shape == (96, NUM_INGRE)
    assert jnp.allclose(out_big, ref_big, atol=2e-2, rtol=0.0), \
        float(jnp.max(jnp.abs(out_big - ref_big)))

    print("KERNEL_OK")
</pallas_src>

<mosaic_0001>
module attributes {stable_mosaic.version = 11 : i64} {
  func.func @decoder_t_kernel(%arg0: i32, %arg1: memref<2x2048xbf16, #tpu.memory_space<vmem>>, %arg2: memref<2048x384xbf16, #tpu.memory_space<vmem>>, %arg3: memref<1x384xf32, #tpu.memory_space<vmem>>, %arg4: memref<384x384xbf16, #tpu.memory_space<vmem>>, %arg5: memref<1x384xf32, #tpu.memory_space<vmem>>, %arg6: memref<2x384xf32, #tpu.memory_space<vmem>>) attributes {dimension_semantics = [#tpu.dimension_semantics<parallel>], iteration_bounds = array<i64: 1>, scalar_prefetch = 0 : i64, scratch_operands = 0 : i64, tpu.core_type = #tpu.core_type<tc>, window_params = [{transform_indices = @transform_0, window_bounds = array<i64: 2, 2048>}, {pipeline_mode = #tpu.pipeline_mode<synchronous>, transform_indices = @transform_1, window_bounds = array<i64: 2048, 384>}, {pipeline_mode = #tpu.pipeline_mode<synchronous>, transform_indices = @transform_2, window_bounds = array<i64: 1, 384>}, {pipeline_mode = #tpu.pipeline_mode<synchronous>, transform_indices = @transform_3, window_bounds = array<i64: 384, 384>}, {pipeline_mode = #tpu.pipeline_mode<synchronous>, transform_indices = @transform_4, window_bounds = array<i64: 1, 384>}, {transform_indices = @transform_5, window_bounds = array<i64: 2, 384>}]} {
    %c0 = arith.constant 0 : index
    %c0_0 = arith.constant 0 : index
    %0 = vector.load %arg1[%c0, %c0_0] : memref<2x2048xbf16, #tpu.memory_space<vmem>>, vector<2x2048xbf16>
    %c0_1 = arith.constant 0 : index
    %c0_2 = arith.constant 0 : index
    %1 = vector.load %arg2[%c0_1, %c0_2] : memref<2048x384xbf16, #tpu.memory_space<vmem>>, vector<2048x384xbf16>
    %cst = arith.constant dense<0.000000e+00> : vector<2x384xf32>
    %2 = tpu.matmul %0, %1, %cst {dimension_numbers = #tpu.dot_dimension_numbers<[1], [0], [0], [1], [0, 0, 1, 1], [], []>} : vector<2x2048xbf16>, vector<2048x384xbf16>, vector<2x384xf32> -> vector<2x384xf32>
    %c0_3 = arith.constant 0 : index
    %c0_4 = arith.constant 0 : index
    %3 = vector.load %arg3[%c0_3, %c0_4] : memref<1x384xf32, #tpu.memory_space<vmem>>, vector<1x384xf32>
    %4 = vector.broadcast %3 : vector<1x384xf32> to vector<2x384xf32>
    %5 = arith.addf %2, %4 : vector<2x384xf32>
    %cst_5 = arith.constant 0.000000e+00 : f32
    %6 = vector.broadcast %cst_5 : f32 to vector<2x384xf32>
    %7 = arith.maximumf %5, %6 : vector<2x384xf32>
    %8 = arith.truncf %7 : vector<2x384xf32> to vector<2x384xbf16>
    %c0_6 = arith.constant 0 : index
    %c0_7 = arith.constant 0 : index
    %9 = vector.load %arg4[%c0_6, %c0_7] : memref<384x384xbf16, #tpu.memory_space<vmem>>, vector<384x384xbf16>
    %cst_8 = arith.constant dense<0.000000e+00> : vector<2x384xf32>
    %10 = tpu.matmul %8, %9, %cst_8 {dimension_numbers = #tpu.dot_dimension_numbers<[1], [0], [0], [1], [0, 0, 1, 1], [], []>} : vector<2x384xbf16>, vector<384x384xbf16>, vector<2x384xf32> -> vector<2x384xf32>
    %c0_9 = arith.constant 0 : index
    %c0_10 = arith.constant 0 : index
    %11 = vector.load %arg5[%c0_9, %c0_10] : memref<1x384xf32, #tpu.memory_space<vmem>>, vector<1x384xf32>
    %12 = vector.broadcast %11 : vector<1x384xf32> to vector<2x384xf32>
    %13 = arith.addf %10, %12 : vector<2x384xf32>
    %14 = arith.negf %13 : vector<2x384xf32>
    %15 = math.exp %14 : vector<2x384xf32>
    %cst_11 = arith.constant 1.000000e+00 : f32
    %16 = vector.broadcast %cst_11 : f32 to vector<2x384xf32>
    %17 = arith.addf %16, %15 : vector<2x384xf32>
    %18 = arith.divf %16, %17 : vector<2x384xf32>
    %c0_12 = arith.constant 0 : index
    %c0_13 = arith.constant 0 : index
    %19 = vector.load %arg6[%c0_12, %c0_13] : memref<2x384xf32, #tpu.memory_space<vmem>>, vector<2x384xf32>
    tpu.vector_store %arg6[%c0_12, %c0_13], %18 {strides = array<i32>} : memref<2x384xf32, #tpu.memory_space<vmem>>, vector<2x384xf32>,
    return
  }
  func.func @transform_0(%arg0: i32) -> (i32, i32) {
    %c0_i32 = arith.constant 0 : i32
    %c0_i32_0 = arith.constant 0 : i32
    return %arg0, %c0_i32 : i32, i32
  }
  func.func @transform_1(%arg0: i32) -> (i32, i32) {
    %c0_i32 = arith.constant 0 : i32
    %c0_i32_0 = arith.constant 0 : i32
    %c0_i32_1 = arith.constant 0 : i32
    return %c0_i32, %c0_i32_0 : i32, i32
  }
  func.func @transform_2(%arg0: i32) -> (i32, i32) {
    %c0_i32 = arith.constant 0 : i32
    %c0_i32_0 = arith.constant 0 : i32
    %c0_i32_1 = arith.constant 0 : i32
    return %c0_i32, %c0_i32_0 : i32, i32
  }
  func.func @transform_3(%arg0: i32) -> (i32, i32) {
    %c0_i32 = arith.constant 0 : i32
    %c0_i32_0 = arith.constant 0 : i32
    %c0_i32_1 = arith.constant 0 : i32
    return %c0_i32, %c0_i32_0 : i32, i32
  }
  func.func @transform_4(%arg0: i32) -> (i32, i32) {
    %c0_i32 = arith.constant 0 : i32
    %c0_i32_0 = arith.constant 0 : i32
    %c0_i32_1 = arith.constant 0 : i32
    return %c0_i32, %c0_i32_0 : i32, i32
  }
  func.func @transform_5(%arg0: i32) -> (i32, i32) {
    %c0_i32 = arith.constant 0 : i32
    %c0_i32_0 = arith.constant 0 : i32
    return %arg0, %c0_i32 : i32, i32
  }
}

</mosaic_0001>

<bundles_post_ra>
// kernel: decoder_t_forward.1
= control target key start
LH: loop header
LB: loop body
LE: loop exit
PB: predicated region body
PF: predicated region fallthrough
CT: control target
= control target key end

     0   :  { %10 = vsyncpa [#allocation3], 0  ;;  %s5865_s0 = inlined_call_operand.vmem [shape: bf16[2,2048], index: 0, kind: input, shape index: {}]   ;;  %s5866_s1 = inlined_call_operand.hbm [shape: bf16[2048,384], index: 1, kind: input, shape index: {}]   ;;  %s5867_s2 = inlined_call_operand.hbm [shape: f32[1,384], index: 2, kind: input, shape index: {}]   ;;  %s5868_s3 = inlined_call_operand.hbm [shape: bf16[384,384], index: 3, kind: input, shape index: {}]   ;;  %s5869_s4 = inlined_call_operand.hbm [shape: f32[1,384], index: 4, kind: input, shape index: {}]   ;;  %s5870_s5 = inlined_call_operand.hbm [shape: f32[2,384], index: 5, kind: output, shape index: {}]  }
   0x1   :  { %11 = vsyncpa [#allocation6], 0 }
   0x2   :  { %12 = vsyncpa [#allocation9], 0 }
   0x3   :  { %13 = vsyncpa [#allocation4], 0  ;;  %s5609_s18 = smov [#allocation5]   ;;  %s5610_s20 = smov [#allocation2]  }
   0x4   :  { %s34_s19 = sshll.u32 %s5609_s18, 4  ;;  %s21_s21 = sshll.u32 %s5610_s20, 4  ;;  %s35_s19 = int_to_ptr.vmem [resolvable:$true] %s34_s19  ;;  %s5651_s21 = int_to_ptr.vmem [resolvable:$true] %s21_s21 }
   0x5   :  { %s5491_s24 = scalar_lea.hbm %s5867_s2, 48 }
   0x6   :  { %p5492_p0 = scmp.ne.s32.totalorder %s5867_s2, %s5491_s24  ;;  %p5495_p1 = scmp.lt.u32.totalorder %s5491_s24, %s5867_s2 }
   0x8   :  { %p5497_p2 = pnand %p5495_p1, %p5492_p0 }
   0xa   :  { %5500 = shalt.err (!%p5497_p2)
}
   0xb   :  { %s5501_s29 = scalar_lea.vmem %s35_s19, 48  ;;  %s5505_s30 = scalar_lea.vmem %s35_s19, 64 }
   0xc   :  { %p5502_p3 = scmp.ne.s32.totalorder %s35_s19, %s5501_s29  ;;  %p5506_p4 = scmp.lt.s32.totalorder %s35_s19, %s35_s19 }
   0xd   :  { %p5507_p5 = scmp.lt.s32.totalorder %s5505_s30, %s5501_s29 }
   0xf   :  { %p5508_p6 = por %p5507_p5, %p5506_p4 }
  0x11   :  { %p5509_p7 = pnand %p5508_p6, %p5502_p3 }
  0x13   :  { %5512 = shalt.err (!%p5509_p7)
}
  0x14   :  { %37 = dma.hbm_to_vmem [thread:$0]  %s5867_s2, 48, %s35_s19, [#allocation6]  }
  0x15   :  { %s5513_s10 = scalar_lea.hbm %s5866_s1, 49152 }
  0x16   :  { %p5514_p8 = scmp.ne.s32.totalorder %s5866_s1, %s5513_s10  ;;  %p5517_p9 = scmp.lt.u32.totalorder %s5513_s10, %s5866_s1 }
  0x18   :  { %p5519_p10 = pnand %p5517_p9, %p5514_p8 }
  0x1a   :  { %5522 = shalt.err (!%p5519_p10)
}
  0x1b   :  { %s5523_s15 = scalar_lea.vmem %s5651_s21, 49152  ;;  %p5528_p12 = scmp.lt.s32.totalorder %s5651_s21, %s5651_s21 }
  0x1c   :  { %p5524_p11 = scmp.ne.s32.totalorder %s5651_s21, %s5523_s15  ;;  %p5529_p13 = scmp.lt.s32.totalorder %s5523_s15, %s5523_s15 }
  0x1e   :  { %p5530_p0 = por %p5529_p13, %p5528_p12 }
  0x20   :  { %p5531_p1 = pnand %p5530_p0, %p5524_p11 }
  0x22   :  { %5534 = shalt.err (!%p5531_p1)
}
  0x23   :  { %s5611_s2 = smov 192   ;;  %s5612_s16 = smov 12  }
  0x24   :  { %27 = dma.hbm_to_vmem [thread:$0]  %s5866_s1, 49152, %s5651_s21, [#allocation3], %s5611_s2, %s5611_s2, %s5612_s16  }
  0x25   :  { %s5613_s19 = smov [#allocation7]   ;;  %s5614_s22 = smov [#allocation8]  }
  0x26   :  { %s43_s20 = sshll.u32 %s5613_s19, 4  ;;  %s56_s23 = sshll.u32 %s5614_s22, 4  ;;  %s44_s20 = int_to_ptr.vmem [resolvable:$true] %s43_s20  ;;  %s57_s23 = int_to_ptr.vmem [resolvable:$true] %s56_s23 }
  0x27   :  { %s5535_s26 = scalar_lea.hbm %s5868_s3, 9216 }
  0x28   :  { %p5536_p2 = scmp.ne.s32.totalorder %s5868_s3, %s5535_s26  ;;  %p5539_p3 = scmp.lt.u32.totalorder %s5535_s26, %s5868_s3 }
  0x2a   :  { %p5541_p4 = pnand %p5539_p3, %p5536_p2 }
  0x2c   :  { %5544 = shalt.err (!%p5541_p4)
}
  0x2d   :  { %s5545_s1 = scalar_lea.vmem %s44_s20, 9216  ;;  %p5550_p6 = scmp.lt.s32.totalorder %s44_s20, %s44_s20 }
  0x2e   :  { %p5546_p5 = scmp.ne.s32.totalorder %s44_s20, %s5545_s1  ;;  %p5551_p7 = scmp.lt.s32.totalorder %s5545_s1, %s5545_s1 }
  0x30   :  { %p5552_p8 = por %p5551_p7, %p5550_p6 }
  0x32   :  { %p5553_p9 = pnand %p5552_p8, %p5546_p5 }
  0x34   :  { %5556 = shalt.err (!%p5553_p9)
}
  0x35   :  { %49 = dma.hbm_to_vmem [thread:$0]  %s5868_s3, 9216, %s44_s20, [#allocation6], %s5611_s2, %s5611_s2, %s5612_s16  }
  0x36   :  { %s5557_s9 = scalar_lea.hbm %s5869_s4, 48 }
  0x37   :  { %p5558_p10 = scmp.ne.s32.totalorder %s5869_s4, %s5557_s9  ;;  %p5561_p11 = scmp.lt.u32.totalorder %s5557_s9, %s5869_s4 }
  0x39   :  { %p5563_p12 = pnand %p5561_p11, %p5558_p10 }
  0x3b   :  { %5566 = shalt.err (!%p5563_p12)
}
  0x3c   :  { %s5567_s14 = scalar_lea.vmem %s57_s23, 48  ;;  %s5571_s15 = scalar_lea.vmem %s57_s23, 64 }
  0x3d   :  { %p5568_p13 = scmp.ne.s32.totalorder %s57_s23, %s5567_s14  ;;  %p5572_p0 = scmp.lt.s32.totalorder %s57_s23, %s57_s23 }
  0x3e   :  { %p5573_p1 = scmp.lt.s32.totalorder %s5571_s15, %s5567_s14 }
  0x40   :  { %p5574_p2 = por %p5573_p1, %p5572_p0 }
  0x42   :  { %p5575_p3 = pnand %p5574_p2, %p5568_p13 }
  0x44   :  { %5578 = shalt.err (!%p5575_p3)
}
  0x45   :  { %59 = dma.hbm_to_vmem [thread:$0]  %s5869_s4, 48, %s57_s23, [#allocation9]  }
  0x46   :  { %5601 = dma.done.wait [#allocation3], 49152  }
  0x47   :  { %5602 = vsyncadd [#allocation3], 4294918144 }
  0x48   :  { %5603 = dma.done.wait [#allocation6], 9264  }
  0x49   :  { %5604 = vsyncadd [#allocation6], 4294958032 }
  0x4a   :  { %5605 = dma.done.wait [#allocation9], 48  }
  0x4b   :  { %5606 = vsyncadd [#allocation9], 4294967248  ;;  %v4869_v0 = vld [vmem:[#allocation2 + $0x4] ss:$12 sps:$4 sm:$0xff]   ;;  %v4873_v2 = vld [vmem:[#allocation2] ss:$12 sps:$4 sm:$0xff]   ;;  %v589_v36 = vlaneseq }
  0x4c   :  { %v4871_v1 = vld [vmem:[#allocation2 + $0x184] ss:$12 sps:$4 sm:$0xff]   ;;  %2768 = vmatprep.subr.bf16.mxu1 %v4869_v0  ;;  %v4874_v3 = vld [vmem:[#allocation2 + $0x180] ss:$12 sps:$4 sm:$0xff]   ;;  %v4875_v4 = vld [vmem:[#allocation2 + $0x1c] ss:$12 sps:$4 sm:$0xff]  }
  0x4d   :  { %2809 = vmatprep.subr.bf16.mxu0 %v4871_v1  ;;  %2769 = vmatpush1.bf16.msra.mxu1 %v4873_v2  ;;  %v4877_v5 = vld [vmem:[#allocation2 + $0x19c] ss:$12 sps:$4 sm:$0xff]   ;;  %v4879_v6 = vld [vmem:[#allocation2 + $0x18] ss:$12 sps:$4 sm:$0xff]   ;;  %v4881_v8 = vld [vmem:[#allocation2 + $0x34] ss:$12 sps:$4 sm:$0xff]  }
  0x4e   :  { %2810 = vmatpush1.bf16.msra.mxu0 %v4874_v3  ;;  %2770 = vmatprep.subr.bf16.mxu1 %v4875_v4  ;;  %v4880_v7 = vld [vmem:[#allocation2 + $0x198] ss:$12 sps:$4 sm:$0xff]   ;;  %v4883_v9 = vld [vmem:[#allocation2 + $0x1b4] ss:$12 sps:$4 sm:$0xff]   ;;  %v4885_v10 = vld [vmem:[#allocation2 + $0x30] ss:$12 sps:$4 sm:$0xff]  }
  0x4f   :  { %2811 = vmatprep.subr.bf16.mxu0 %v4877_v5  ;;  %v4886_v11 = vld [vmem:[#allocation2 + $0x1b0] ss:$12 sps:$4 sm:$0xff]   ;;  %v4887_v12 = vld [vmem:[#allocation2 + $0x4c] ss:$12 sps:$4 sm:$0xff]   ;;  %v4891_v14 = vld [vmem:[#allocation2 + $0x48] ss:$12 sps:$4 sm:$0xff]  }
  0x50   :  { %v4889_v13 = vld [vmem:[#allocation2 + $0x1cc] ss:$12 sps:$4 sm:$0xff]   ;;  %v4892_v15 = vld [vmem:[#allocation2 + $0x1c8] ss:$12 sps:$4 sm:$0xff]   ;;  %v4893_v16 = vld [vmem:[#allocation2 + $0x64] ss:$12 sps:$4 sm:$0xff]  }
  0x51   :  { %2771 = vmatpush1.bf16.msra.mxu1 %v4879_v6  ;;  %v4895_v17 = vld [vmem:[#allocation2 + $0x1e4] ss:$12 sps:$4 sm:$0xff]   ;;  %v4897_v18 = vld [vmem:[#allocation2 + $0x60] ss:$12 sps:$4 sm:$0xff]   ;;  %v4899_v20 = vld [vmem:[#allocation2 + $0x7c] ss:$12 sps:$4 sm:$0xff]  }
  0x52   :  { %2812 = vmatpush1.bf16.msra.mxu0 %v4880_v7  ;;  %2772 = vmatprep.subr.bf16.mxu1 %v4881_v8  ;;  %v4898_v19 = vld [vmem:[#allocation2 + $0x1e0] ss:$12 sps:$4 sm:$0xff]   ;;  %v4901_v21 = vld [vmem:[#allocation2 + $0x1fc] ss:$12 sps:$4 sm:$0xff]   ;;  %v4903_v22 = vld [vmem:[#allocation2 + $0x78] ss:$12 sps:$4 sm:$0xff]  }
  0x53   :  { %2813 = vmatprep.subr.bf16.mxu0 %v4883_v9  ;;  %v4904_v23 = vld [vmem:[#allocation2 + $0x1f8] ss:$12 sps:$4 sm:$0xff]   ;;  %v4905_v24 = vld [vmem:[#allocation2 + $0x94] ss:$12 sps:$4 sm:$0xff]   ;;  %v4909_v26 = vld [vmem:[#allocation2 + $0x90] ss:$12 sps:$4 sm:$0xff]  }
  0x54   :  { %v4907_v25 = vld [vmem:[#allocation2 + $0x214] ss:$12 sps:$4 sm:$0xff]   ;;  %v4910_v27 = vld [vmem:[#allocation2 + $0x210] ss:$12 sps:$4 sm:$0xff]   ;;  %v4911_v28 = vld [vmem:[#allocation2 + $0xac] ss:$12 sps:$4 sm:$0xff]  }
  0x55   :  { %2773 = vmatpush1.bf16.msra.mxu1 %v4885_v10  ;;  %v4913_v29 = vld [vmem:[#allocation2 + $0x22c] ss:$12 sps:$4 sm:$0xff]   ;;  %v4915_v30 = vld [vmem:[#allocation2 + $0xa8] ss:$12 sps:$4 sm:$0xff]   ;;  %v4917_v32 = vld [vmem:[#allocation2 + $0xc4] ss:$12 sps:$4 sm:$0xff]  }
  0x56   :  { %2814 = vmatpush1.bf16.msra.mxu0 %v4886_v11  ;;  %2774 = vmatprep.subr.bf16.mxu1 %v4887_v12  ;;  %v4916_v31 = vld [vmem:[#allocation2 + $0x228] ss:$12 sps:$4 sm:$0xff]   ;;  %v4919_v33 = vld [vmem:[#allocation2 + $0x244] ss:$12 sps:$4 sm:$0xff]   ;;  %v4921_v34 = vld [vmem:[#allocation2 + $0xc0] ss:$12 sps:$4 sm:$0xff]  }
  0x57   :  { %2815 = vmatprep.subr.bf16.mxu0 %v4889_v13  ;;  %v4922_v35 = vld [vmem:[#allocation2 + $0x240] ss:$12 sps:$4 sm:$0xff]   ;;  %v5615_v37 = vmov 1966171168   ;;  %v4923_v39 = vld [vmem:[#allocation2 + $0xdc] ss:$12 sps:$4 sm:$0xff]  }
  0x58   :  { %v608_v38 = vunpack.c.l.s4 %v5615_v37  ;;  %v4925_v40 = vld [vmem:[#allocation2 + $0x25c] ss:$12 sps:$4 sm:$0xff]   ;;  %v4927_v41 = vld [vmem:[#allocation2 + $0xd8] ss:$12 sps:$4 sm:$0xff]   ;;  %v5706_v42 = vshrl.u32 %v589_v36, 7  ;;  %v73_v53 = vld [vmem:[%s5865_s0] sm:$0xff] }
  0x59   :  { %2775 = vmatpush1.bf16.msra.mxu1 %v4891_v14  ;;  %v4928_v44 = vld [vmem:[#allocation2 + $0x258] ss:$12 sps:$4 sm:$0xff]   ;;  %v4929_v45 = vld [vmem:[#allocation2 + $0xf4] ss:$12 sps:$4 sm:$0xff]   ;;  %v4933_v47 = vld [vmem:[#allocation2 + $0xf0] ss:$12 sps:$4 sm:$0xff]   ;;  %v606_v5 = vcombine.high %v73_v53, %v73_v53 }
  0x5a   :  { %2816 = vmatpush1.bf16.msra.mxu0 %v4892_v15  ;;  %2776 = vmatprep.subr.bf16.mxu1 %v4893_v16  ;;  %v609_v43 = vunpack.c.0.s8 %v608_v38  ;;  %v4931_v46 = vld [vmem:[#allocation2 + $0x274] ss:$12 sps:$4 sm:$0xff]   ;;  %v4934_v48 = vld [vmem:[#allocation2 + $0x270] ss:$12 sps:$4 sm:$0xff]   ;;  %v4935_v50 = vld [vmem:[#allocation2 + $0x10c] ss:$12 sps:$4 sm:$0xff]  }
  0x5b   :  { %2817 = vmatprep.subr.bf16.mxu0 %v4895_v17  ;;  %v4937_v51 = vld [vmem:[#allocation2 + $0x28c] ss:$12 sps:$4 sm:$0xff]   ;;  %v4939_v52 = vld [vmem:[#allocation2 + $0x108] ss:$12 sps:$4 sm:$0xff]   ;;  %v4941_v56 = vld [vmem:[#allocation2 + $0x124] ss:$12 sps:$4 sm:$0xff]  }
  0x5c   :  { %v5709_v49 = vsub.s32 %v609_v43, %v5706_v42  ;;  %v4940_v54 = vld [vmem:[#allocation2 + $0x288] ss:$12 sps:$4 sm:$0xff]   ;;  %v4943_v57 = vld [vmem:[#allocation2 + $0x2a4] ss:$12 sps:$4 sm:$0xff]   ;;  %v4945_v59 = vld [vmem:[#allocation2 + $0x120] ss:$12 sps:$4 sm:$0xff]  }
  0x5d   :  { %2777 = vmatpush1.bf16.msra.mxu1 %v4897_v18  ;;  %v4946_v60 = vld [vmem:[#allocation2 + $0x2a0] ss:$12 sps:$4 sm:$0xff]   ;;  %v4947_v62 = vld [vmem:[#allocation2 + $0x13c] ss:$12 sps:$4 sm:$0xff]   ;;  %v4951_v1 = vld [vmem:[#allocation2 + $0x138] ss:$12 sps:$4 sm:$0xff]  }
  0x5e   :  { %2818 = vmatpush1.bf16.msra.mxu0 %v4898_v19  ;;  %2778 = vmatprep.subr.bf16.mxu1 %v4899_v20  ;;  %v613_v55 = vrot.slane %v73_v53, %v5709_v49  ;;  %v4949_v63 = vld [vmem:[#allocation2 + $0x2bc] ss:$12 sps:$4 sm:$0xff]   ;;  %v4952_v2 = vld [vmem:[#allocation2 + $0x2b8] ss:$12 sps:$4 sm:$0xff]   ;;  %v4953_v3 = vld [vmem:[#allocation2 + $0x154] ss:$12 sps:$4 sm:$0xff]   ;;  %v5720_v10 = vrot.slane %v606_v5, %v5709_v49 }
  0x5f   :  { %2819 = vmatprep.subr.bf16.mxu0 %v4901_v21  ;;  %v4955_v4 = vld [vmem:[#allocation2 + $0x2d4] ss:$12 sps:$4 sm:$0xff]   ;;  %v4957_v6 = vld [vmem:[#allocation2 + $0x150] ss:$12 sps:$4 sm:$0xff]   ;;  %v4959_v8 = vld [vmem:[#allocation2 + $0x16c] ss:$12 sps:$4 sm:$0xff]  }
  0x60   :  { %v621_v58 = vcombine.high %v613_v55, %v613_v55  ;;  %v4958_v7 = vld [vmem:[#allocation2 + $0x2d0] ss:$12 sps:$4 sm:$0xff]   ;;  %v4961_v9 = vld [vmem:[#allocation2 + $0x2ec] ss:$12 sps:$4 sm:$0xff]   ;;  %v4963_v11 = vld [vmem:[#allocation2 + $0x168] ss:$12 sps:$4 sm:$0xff]   ;;  %v5723_v12 = vrot.slane %v613_v55, %v5709_v49  ;;  %v622_v17 = vcombine.high %v5720_v10, %v5720_v10 }
  0x61   :  { %2779 = vmatpush1.bf16.msra.mxu1 %v4903_v22  ;;  %v4964_v13 = vld [vmem:[#allocation2 + $0x2e8] ss:$12 sps:$4 sm:$0xff]   ;;  %v4967_v14 = vld [vmem:[#allocation2 + $0x304] ss:$12 sps:$4 sm:$0xff]   ;;  %v4965_v16 = vld [vmem:[#allocation2 + $0x300] ss:$12 sps:$4 sm:$0xff]  }
  0x62   :  { %2820 = vmatpush1.bf16.msra.mxu0 %v4904_v23  ;;  %2780 = vmatprep.subr.bf16.mxu1 %v4905_v24  ;;  %v643_v61 = vrot.slane %v621_v58, %v5709_v49  ;;  %v4968_v15 = vld [vmem:[#allocation2 + $0xc8] ss:$12 sps:$4 sm:$0xff]   ;;  %v5729_v18 = vcombine.high %v5723_v12, %v5723_v12  ;;  %v4973_v21 = vld [vmem:[#allocation2 + $0xe0] ss:$12 sps:$4 sm:$0xff]   ;;  %v5732_v22 = vrot.slane %v622_v17, %v5709_v49  ;;  %v4970_v23 = vld [vmem:[#allocation2 + $0x318] ss:$12 sps:$4 sm:$0xff]  }
  0x63   :  { %2821 = vmatprep.subr.bf16.mxu0 %v4907_v25  ;;  %v4969_v19 = vld [vmem:[#allocation2 + $0x8] ss:$12 sps:$4 sm:$0xff]   ;;  %v4974_v24 = vld [vmem:[#allocation2 + $0x20] ss:$12 sps:$4 sm:$0xff]   ;;  %v4998_v43 = vld [vmem:[#allocation2 + $0x158] ss:$12 sps:$4 sm:$0xff]  }
  0x64   :  { %v5716_v0 = vcombine.high %v643_v61, %v643_v61  ;;  %2800 = vmatprep.mubr.bf16.mxu1 %v643_v61  ;;  %v4972_v20 = vld [vmem:[#allocation2 + $0x31c] ss:$12 sps:$4 sm:$0xff]   ;;  %v4977_v25 = vld [vmem:[#allocation2 + $0x334] ss:$12 sps:$4 sm:$0xff]   ;;  %vm5618_vm0 = vmmov 0  }
  0x65   :  { %2781 = vmatpush1.bf16.msra.mxu1 %v4909_v26  ;;  %v4978_v26 = vld [vmem:[#allocation2 + $0xf8] ss:$12 sps:$4 sm:$0xff]   ;;  %v4989_v36 = vld [vmem:[#allocation2 + $0x68] ss:$12 sps:$4 sm:$0xff]   ;;  %v4993_v38 = vld [vmem:[#allocation2 + $0x140] ss:$12 sps:$4 sm:$0xff]  }
  0x66   :  { %2822 = vmatpush1.bf16.msra.mxu0 %v4910_v27  ;;  %2782 = vmatprep.subr.bf16.mxu1 %v4911_v28  ;;  %v4975_v27 = vld [vmem:[#allocation2 + $0x330] ss:$12 sps:$4 sm:$0xff]   ;;  %v4979_v28 = vld [vmem:[#allocation2 + $0x38] ss:$12 sps:$4 sm:$0xff]   ;;  %v5005_v53 = vld [vmem:[#allocation2 + $0x3c0] ss:$12 sps:$4 sm:$0xff]  }
  0x67   :  { %2823 = vmatprep.subr.bf16.mxu0 %v4913_v29  ;;  %2841 = vmatprep.mubr.bf16.mxu0 %v5716_v0  ;;  %v4982_v29 = vld [vmem:[#allocation2 + $0x34c] ss:$12 sps:$4 sm:$0xff]   ;;  %v4992_v37 = vld [vmem:[#allocation2 + $0x37c] ss:$12 sps:$4 sm:$0xff]  }
  0x68   :  { %v5012_v55 = vld [vmem:[#allocation2 + $0x3dc] ss:$12 sps:$4 sm:$0xff]   ;;  %v5014_v58 = vld [vmem:[#allocation2 + $0x1a0] ss:$12 sps:$4 sm:$0xff]  }
  0x69   :  { %2783 = vmatpush1.bf16.msra.mxu1 %v4915_v30  ;;  %v4983_v30 = vld [vmem:[#allocation2 + $0x110] ss:$12 sps:$4 sm:$0xff]   ;;  %v5028_v5 = vld [vmem:[#allocation2 + $0x2a8] ss:$12 sps:$4 sm:$0xff]  }
  0x6a   :  { %2824 = vmatpush1.bf16.msra.mxu0 %v4916_v31  ;;  %2784 = vmatprep.subr.bf16.mxu1 %v4917_v32  ;;  %v4980_v31 = vld [vmem:[#allocation2 + $0x348] ss:$12 sps:$4 sm:$0xff]   ;;  %v4984_v32 = vld [vmem:[#allocation2 + $0x50] ss:$12 sps:$4 sm:$0xff]  }
  0x6b   :  { %2825 = vmatprep.subr.bf16.mxu0 %v4919_v33  ;;  %v4987_v33 = vld [vmem:[#allocation2 + $0x364] ss:$12 sps:$4 sm:$0xff]  }
  0x6c   :  { %v5043_v17 = vld [vmem:[#allocation2 + $0x2f0] ss:$12 sps:$4 sm:$0xff]  }
  0x6d   :  { %2785 = vmatpush1.bf16.msra.mxu1 %v4921_v34  ;;  %v4988_v34 = vld [vmem:[#allocation2 + $0x128] ss:$12 sps:$4 sm:$0xff]  }
  0x6e   :  { %2826 = vmatpush1.bf16.msra.mxu0 %v4922_v35  ;;  %2786 = vmatprep.subr.bf16.mxu1 %v4923_v39  ;;  %v4985_v35 = vld [vmem:[#allocation2 + $0x360] ss:$12 sps:$4 sm:$0xff]   ;;  %v4990_v39 = vld [vmem:[#allocation2 + $0x378] ss:$12 sps:$4 sm:$0xff]  }
  0x6f   :  { %2827 = vmatprep.subr.bf16.mxu0 %v4925_v40  ;;  %v4994_v40 = vld [vmem:[#allocation2 + $0x80] ss:$12 sps:$4 sm:$0xff]  }
  0x71   :  { %2787 = vmatpush1.bf16.msra.mxu1 %v4927_v41  ;;  %v4997_v41 = vld [vmem:[#allocation2 + $0x394] ss:$12 sps:$4 sm:$0xff]  }
  0x72   :  { %2828 = vmatpush1.bf16.msra.mxu0 %v4928_v44  ;;  %2788 = vmatprep.subr.bf16.mxu1 %v4929_v45  ;;  %v4995_v44 = vld [vmem:[#allocation2 + $0x390] ss:$12 sps:$4 sm:$0xff]   ;;  %v4999_v45 = vld [vmem:[#allocation2 + $0x98] ss:$12 sps:$4 sm:$0xff]  }
  0x73   :  { %2829 = vmatprep.subr.bf16.mxu0 %v4931_v46  ;;  %v5002_v46 = vld [vmem:[#allocation2 + $0x3ac] ss:$12 sps:$4 sm:$0xff]  }
  0x75   :  { %2789 = vmatpush1.bf16.msra.mxu1 %v4933_v47  ;;  %v5003_v47 = vld [vmem:[#allocation2 + $0x170] ss:$12 sps:$4 sm:$0xff]  }
  0x76   :  { %2830 = vmatpush1.bf16.msra.mxu0 %v4934_v48  ;;  %2790 = vmatprep.subr.bf16.mxu1 %v4935_v50  ;;  %v5000_v48 = vld [vmem:[#allocation2 + $0x3a8] ss:$12 sps:$4 sm:$0xff]   ;;  %v5004_v50 = vld [vmem:[#allocation2 + $0xb0] ss:$12 sps:$4 sm:$0xff]  }
  0x77   :  { %2831 = vmatprep.subr.bf16.mxu0 %v4937_v51  ;;  %v5007_v51 = vld [vmem:[#allocation2 + $0x3c4] ss:$12 sps:$4 sm:$0xff]  }
  0x79   :  { %2791 = vmatpush1.bf16.msra.mxu1 %v4939_v52  ;;  %v5008_v52 = vld [vmem:[#allocation2 + $0x248] ss:$12 sps:$4 sm:$0xff]  }
  0x7a   :  { %2832 = vmatpush1.bf16.msra.mxu0 %v4940_v54  ;;  %2792 = vmatprep.subr.bf16.mxu1 %v4941_v56  ;;  %v5009_v54 = vld [vmem:[#allocation2 + $0x188] ss:$12 sps:$4 sm:$0xff]   ;;  %v5013_v56 = vld [vmem:[#allocation2 + $0x260] ss:$12 sps:$4 sm:$0xff]  }
  0x7b   :  { %2833 = vmatprep.subr.bf16.mxu0 %v4943_v57  ;;  %v5010_v57 = vld [vmem:[#allocation2 + $0x3d8] ss:$12 sps:$4 sm:$0xff]  }
  0x7d   :  { %2793 = vmatpush1.bf16.msra.mxu1 %v4945_v59  ;;  %v5017_v59 = vld [vmem:[#allocation2 + $0x3f4] ss:$12 sps:$4 sm:$0xff]  }
  0x7e   :  { %2834 = vmatpush1.bf16.msra.mxu0 %v4946_v60  ;;  %2794 = vmatprep.subr.bf16.mxu1 %v4947_v62  ;;  %v5018_v60 = vld [vmem:[#allocation2 + $0x278] ss:$12 sps:$4 sm:$0xff]  }
  0x7f   :  { %2835 = vmatprep.subr.bf16.mxu0 %v4949_v63  ;;  %v5019_v62 = vld [vmem:[#allocation2 + $0x1b8] ss:$12 sps:$4 sm:$0xff]  }
  0x80   :  { %v5022_v63 = vld [vmem:[#allocation2 + $0x40c] ss:$12 sps:$4 sm:$0xff]  }
  0x81   :  { %2795 = vmatpush1.bf16.msra.mxu1 %v4951_v1  ;;  %v5023_v1 = vld [vmem:[#allocation2 + $0x290] ss:$12 sps:$4 sm:$0xff]  }
  0x82   :  { %2836 = vmatpush1.bf16.msra.mxu0 %v4952_v2  ;;  %2796 = vmatprep.subr.bf16.mxu1 %v4953_v3  ;;  %v5020_v2 = vld [vmem:[#allocation2 + $0x408] ss:$12 sps:$4 sm:$0xff]   ;;  %v5024_v3 = vld [vmem:[#allocation2 + $0x1d0] ss:$12 sps:$4 sm:$0xff]  }
  0x83   :  { %2837 = vmatprep.subr.bf16.mxu0 %v4955_v4  ;;  %v5027_v4 = vld [vmem:[#allocation2 + $0x424] ss:$12 sps:$4 sm:$0xff]  }
  0x85   :  { %2797 = vmatpush1.bf16.msra.mxu1 %v4957_v6  ;;  %v5025_v6 = vld [vmem:[#allocation2 + $0x420] ss:$12 sps:$4 sm:$0xff]  }
  0x86   :  { %2838 = vmatpush1.bf16.msra.mxu0 %v4958_v7  ;;  %2798 = vmatprep.subr.bf16.mxu1 %v4959_v8  ;;  %v5029_v7 = vld [vmem:[#allocation2 + $0x1e8] ss:$12 sps:$4 sm:$0xff]   ;;  %v5033_v8 = vld [vmem:[#allocation2 + $0x2c0] ss:$12 sps:$4 sm:$0xff]  }
  0x87   :  { %2839 = vmatprep.subr.bf16.mxu0 %v4961_v9  ;;  %v5030_v9 = vld [vmem:[#allocation2 + $0x438] ss:$12 sps:$4 sm:$0xff]  }
  0x89   :  { %2799 = vmatpush1.bf16.msra.mxu1 %v4963_v11  ;;  %v5034_v11 = vld [vmem:[#allocation2 + $0x200] ss:$12 sps:$4 sm:$0xff]  }
  0x8a   :  { %2840 = vmatpush1.bf16.msra.mxu0 %v4964_v13  ;;  %4596 = vmatprep.subr.bf16.mxu1 %v4968_v15  ;;  %v5038_v13 = vld [vmem:[#allocation2 + $0x2d8] ss:$12 sps:$4 sm:$0xff]  }
  0x8b   :  { %2850 = vmatprep.subr.bf16.mxu0 %v4967_v14  ;;  %v5035_v14 = vld [vmem:[#allocation2 + $0x450] ss:$12 sps:$4 sm:$0xff]   ;;  %v5039_v15 = vld [vmem:[#allocation2 + $0x218] ss:$12 sps:$4 sm:$0xff]  }
  0x8c   :  { %2801 = vmatmul.mubr.bf16.vlgmr.msra.gmra.mrb[0].mxu1 %v5723_v12 }
  0x8d   :  { %2842 = vmatmul.mubr.bf16.vlgmr.msra.gmra.mrb[0].mxu0 %v5729_v18  ;;  %4597 = vmatpush3.bf16.msra.mxu1 %v4969_v19  ;;  %v5040_v19 = vld [vmem:[#allocation2 + $0x468] ss:$12 sps:$4 sm:$0xff]  }
  0x8e   :  { %2851 = vmatpush1.bf16.msra.mxu0 %v4965_v16  ;;  %4598 = vmatprep.subr.bf16.mxu1 %v4973_v21  ;;  %v5042_v16 = vld [vmem:[#allocation2 + $0x46c] ss:$12 sps:$4 sm:$0xff]   ;;  %v5048_v21 = vld [vmem:[#allocation2 + $0x484] ss:$12 sps:$4 sm:$0xff]  }
  0x8f   :  { %2852 = vmatprep.subr.bf16.mxu0 %v4972_v20  ;;  %3128 = vmatprep.mubr.bf16.mxu1 %v643_v61  ;;  %v5015_v61 = vld [vmem:[#allocation2 + $0x3f0] ss:$12 sps:$4 sm:$0xff]  }
  0x90   :  { %2882 = vmatprep.mubr.bf16.mxu0 %v5732_v22  ;;  %v5044_v20 = vld [vmem:[#allocation2 + $0x230] ss:$12 sps:$4 sm:$0xff]  }
  0x91   :  { %4599 = vmatpush3.bf16.msra.mxu1 %v4974_v24  ;;  %v5046_v24 = vld [vmem:[#allocation2 + $0x480] ss:$12 sps:$4 sm:$0xff]  }
  0x92   :  { %2853 = vmatpush1.bf16.msra.mxu0 %v4970_v23  ;;  %4600 = vmatprep.subr.bf16.mxu1 %v4978_v26  ;;  %v5049_v23 = vld [vmem:[#allocation2 + $0x3c8] ss:$12 sps:$4 sm:$0xff]  }
  0x93   :  { %2854 = vmatprep.subr.bf16.mxu0 %v4977_v25  ;;  %v5741_v25 = vrot.slane %v5720_v10, %v5709_v49  ;;  %v5050_v26 = vld [vmem:[#allocation2 + $0x308] ss:$12 sps:$4 sm:$0xff]  }
  0x94   :  { %v5058_v10 = vld [vmem:[#allocation2 + $0x4b4] ss:$12 sps:$4 sm:$0xff]  }
  0x95   :  { %4601 = vmatpush3.bf16.msra.mxu1 %v4979_v28  ;;  %v5054_v28 = vld [vmem:[#allocation2 + $0x3e0] ss:$12 sps:$4 sm:$0xff]  }
  0x96   :  { %2855 = vmatpush1.bf16.msra.mxu0 %v4975_v27  ;;  %4602 = vmatprep.subr.bf16.mxu1 %v4983_v30  ;;  %v5053_v27 = vld [vmem:[#allocation2 + $0x49c] ss:$12 sps:$4 sm:$0xff]   ;;  %v5745_v30 = vcombine.high %v5732_v22, %v5732_v22 }
  0x97   :  { %2856 = vmatprep.subr.bf16.mxu0 %v4982_v29  ;;  %v5051_v29 = vld [vmem:[#allocation2 + $0x498] ss:$12 sps:$4 sm:$0xff]  }
  0x99   :  { %4603 = vmatpush3.bf16.msra.mxu1 %v4984_v32  ;;  %v5059_v32 = vld [vmem:[#allocation2 + $0x3f8] ss:$12 sps:$4 sm:$0xff]  }
  0x9a   :  { %2857 = vmatpush1.bf16.msra.mxu0 %v4980_v31  ;;  %4604 = vmatprep.subr.bf16.mxu1 %v4988_v34  ;;  %v5055_v31 = vld [vmem:[#allocation2 + $0x320] ss:$12 sps:$4 sm:$0xff]   ;;  %v5060_v34 = vld [vmem:[#allocation2 + $0x338] ss:$12 sps:$4 sm:$0xff]  }
  0x9b   :  { %2858 = vmatprep.subr.bf16.mxu0 %v4987_v33  ;;  %v5056_v33 = vld [vmem:[#allocation2 + $0x4b0] ss:$12 sps:$4 sm:$0xff]  }
  0x9d   :  { %4605 = vmatpush3.bf16.msra.mxu1 %v4989_v36  ;;  %v5064_v36 = vld [vmem:[#allocation2 + $0x410] ss:$12 sps:$4 sm:$0xff]  }
  0x9e   :  { %2859 = vmatpush1.bf16.msra.mxu0 %v4985_v35  ;;  %4606 = vmatprep.subr.bf16.mxu1 %v4993_v38  ;;  %v5063_v35 = vld [vmem:[#allocation2 + $0x4cc] ss:$12 sps:$4 sm:$0xff]   ;;  %v5068_v38 = vld [vmem:[#allocation2 + $0x4e4] ss:$12 sps:$4 sm:$0xff]  }
  0x9f   :  { %2860 = vmatprep.subr.bf16.mxu0 %v4992_v37  ;;  %v5065_v37 = vld [vmem:[#allocation2 + $0x350] ss:$12 sps:$4 sm:$0xff]  }
  0xa1   :  { %4607 = vmatpush3.bf16.msra.mxu1 %v4994_v40  ;;  %v5066_v40 = vld [vmem:[#allocation2 + $0x4e0] ss:$12 sps:$4 sm:$0xff]  }
  0xa2   :  { %2861 = vmatpush1.bf16.msra.mxu0 %v4990_v39  ;;  %4608 = vmatprep.subr.bf16.mxu1 %v4998_v43  ;;  %v5069_v39 = vld [vmem:[#allocation2 + $0x428] ss:$12 sps:$4 sm:$0xff]   ;;  %v5074_v43 = vld [vmem:[#allocation2 + $0x440] ss:$12 sps:$4 sm:$0xff]  }
  0xa3   :  { %2862 = vmatprep.subr.bf16.mxu0 %v4997_v41  ;;  %v5073_v41 = vld [vmem:[#allocation2 + $0x4fc] ss:$12 sps:$4 sm:$0xff]  }
  0xa5   :  { %4609 = vmatpush3.bf16.msra.mxu1 %v4999_v45  ;;  %v5075_v45 = vld [vmem:[#allocation2 + $0x380] ss:$12 sps:$4 sm:$0xff]  }
  0xa6   :  { %2863 = vmatpush1.bf16.msra.mxu0 %v4995_v44  ;;  %4610 = vmatprep.subr.bf16.mxu1 %v5003_v47  ;;  %v5071_v44 = vld [vmem:[#allocation2 + $0x4f8] ss:$12 sps:$4 sm:$0xff]  }
  0xa7   :  { %2864 = vmatprep.subr.bf16.mxu0 %v5002_v46  ;;  %v5078_v46 = vld [vmem:[#allocation2 + $0x514] ss:$12 sps:$4 sm:$0xff]   ;;  %v5079_v47 = vld [vmem:[#allocation2 + $0x458] ss:$12 sps:$4 sm:$0xff]  }
  0xa9   :  { %4611 = vmatpush3.bf16.msra.mxu1 %v5004_v50  ;;  %v5080_v50 = vld [vmem:[#allocation2 + $0x398] ss:$12 sps:$4 sm:$0xff]  }
  0xaa   :  { %2865 = vmatpush1.bf16.msra.mxu0 %v5000_v48  ;;  %4618 = vmatprep.subr.bf16.mxu1 %v5008_v52  ;;  %v5076_v48 = vld [vmem:[#allocation2 + $0x510] ss:$12 sps:$4 sm:$0xff]  }
  0xab   :  { %2866 = vmatprep.subr.bf16.mxu0 %v5007_v51  ;;  %v5083_v51 = vld [vmem:[#allocation2 + $0x52c] ss:$12 sps:$4 sm:$0xff]   ;;  %v5084_v52 = vld [vmem:[#allocation2 + $0x470] ss:$12 sps:$4 sm:$0xff]  }
  0xac   :  { %3129 = vmatmul.mubr.bf16.vlgmr.msra.gmra.mrb[4].mxu1 %v5723_v12  ;;  %v5037_v12 = vld [vmem:[#allocation2 + $0x454] ss:$12 sps:$4 sm:$0xff]  }
  0xad   :  { %4619 = vmatpush3.bf16.msra.mxu1 %v5009_v54  ;;  %3168 = vmatprep.mubr.bf16.mxu1 %v5716_v0  ;;  %v5032_v0 = vld [vmem:[#allocation2 + $0x43c] ss:$12 sps:$4 sm:$0xff]  }
  0xae   :  { %2867 = vmatpush1.bf16.msra.mxu0 %v5005_v53  ;;  %4620 = vmatprep.subr.bf16.mxu1 %v5013_v56  ;;  %v5081_v53 = vld [vmem:[#allocation2 + $0x528] ss:$12 sps:$4 sm:$0xff]   ;;  %v5085_v54 = vld [vmem:[#allocation2 + $0x3b0] ss:$12 sps:$4 sm:$0xff]  }
  0xaf   :  { %2868 = vmatprep.subr.bf16.mxu0 %v5012_v55  ;;  %v5088_v55 = vld [vmem:[#allocation2 + $0x544] ss:$12 sps:$4 sm:$0xff]   ;;  %v5089_v56 = vld [vmem:[#allocation2 + $0x548] ss:$12 sps:$4 sm:$0xff]  }
  0xb1   :  { %4621 = vmatpush3.bf16.msra.mxu1 %v5014_v58  ;;  %v5090_v58 = vld [vmem:[#allocation2 + $0x488] ss:$12 sps:$4 sm:$0xff]  }
  0xb2   :  { %2869 = vmatpush1.bf16.msra.mxu0 %v5010_v57  ;;  %4622 = vmatprep.subr.bf16.mxu1 %v5018_v60  ;;  %v5086_v57 = vld [vmem:[#allocation2 + $0x540] ss:$12 sps:$4 sm:$0xff]  }
  0xb3   :  { %2870 = vmatprep.subr.bf16.mxu0 %v5017_v59  ;;  %v5093_v59 = vld [vmem:[#allocation2 + $0x55c] ss:$12 sps:$4 sm:$0xff]   ;;  %v5094_v60 = vld [vmem:[#allocation2 + $0x560] ss:$12 sps:$4 sm:$0xff]  }
  0xb5   :  { %4623 = vmatpush3.bf16.msra.mxu1 %v5019_v62  ;;  %v5095_v62 = vld [vmem:[#allocation2 + $0x4a0] ss:$12 sps:$4 sm:$0xff]  }
  0xb6   :  { %2871 = vmatpush1.bf16.msra.mxu0 %v5015_v61  ;;  %4624 = vmatprep.subr.bf16.mxu1 %v5023_v1  ;;  %v5091_v61 = vld [vmem:[#allocation2 + $0x558] ss:$12 sps:$4 sm:$0xff]  }
  0xb7   :  { %2872 = vmatprep.subr.bf16.mxu0 %v5022_v63  ;;  %v5098_v63 = vld [vmem:[#allocation2 + $0x574] ss:$12 sps:$4 sm:$0xff]   ;;  %v5099_v1 = vld [vmem:[#allocation2 + $0x578] ss:$12 sps:$4 sm:$0xff]  }
  0xb9   :  { %4625 = vmatpush3.bf16.msra.mxu1 %v5024_v3  ;;  %v5100_v3 = vld [vmem:[#allocation2 + $0x4b8] ss:$12 sps:$4 sm:$0xff]  }
  0xba   :  { %2873 = vmatpush1.bf16.msra.mxu0 %v5020_v2  ;;  %4626 = vmatprep.subr.bf16.mxu1 %v5028_v5  ;;  %v5096_v2 = vld [vmem:[#allocation2 + $0x570] ss:$12 sps:$4 sm:$0xff]  }
  0xbb   :  { %2874 = vmatprep.subr.bf16.mxu0 %v5027_v4  ;;  %v5103_v4 = vld [vmem:[#allocation2 + $0x58c] ss:$12 sps:$4 sm:$0xff]   ;;  %v5104_v5 = vld [vmem:[#allocation2 + $0x590] ss:$12 sps:$4 sm:$0xff]  }
  0xbd   :  { %4627 = vmatpush3.bf16.msra.mxu1 %v5029_v7  ;;  %v5105_v7 = vld [vmem:[#allocation2 + $0x4d0] ss:$12 sps:$4 sm:$0xff]  }
  0xbe   :  { %2875 = vmatpush1.bf16.msra.mxu0 %v5025_v6  ;;  %4628 = vmatprep.subr.bf16.mxu1 %v5033_v8  ;;  %v5101_v6 = vld [vmem:[#allocation2 + $0x588] ss:$12 sps:$4 sm:$0xff]  }
  0xbf   :  { %2876 = vmatprep.subr.bf16.mxu0 %v5032_v0  ;;  %v5108_v0 = vld [vmem:[#allocation2 + $0x5a4] ss:$12 sps:$4 sm:$0xff]   ;;  %v5109_v8 = vld [vmem:[#allocation2 + $0x5a8] ss:$12 sps:$4 sm:$0xff]  }
  0xc1   :  { %4629 = vmatpush3.bf16.msra.mxu1 %v5034_v11  ;;  %v5110_v11 = vld [vmem:[#allocation2 + $0x4e8] ss:$12 sps:$4 sm:$0xff]  }
  0xc2   :  { %2877 = vmatpush1.bf16.msra.mxu0 %v5030_v9  ;;  %4630 = vmatprep.subr.bf16.mxu1 %v5038_v13  ;;  %v5106_v9 = vld [vmem:[#allocation2 + $0x5a0] ss:$12 sps:$4 sm:$0xff]  }
  0xc3   :  { %2878 = vmatprep.subr.bf16.mxu0 %v5037_v12  ;;  %v5113_v12 = vld [vmem:[#allocation2 + $0x5bc] ss:$12 sps:$4 sm:$0xff]   ;;  %v5114_v13 = vld [vmem:[#allocation2 + $0x5c0] ss:$12 sps:$4 sm:$0xff]  }
  0xc5   :  { %4631 = vmatpush3.bf16.msra.mxu1 %v5039_v15  ;;  %v5115_v15 = vld [vmem:[#allocation2 + $0x500] ss:$12 sps:$4 sm:$0xff]  }
  0xc6   :  { %2879 = vmatpush1.bf16.msra.mxu0 %v5035_v14  ;;  %4632 = vmatprep.subr.bf16.mxu1 %v5043_v17  ;;  %v5111_v14 = vld [vmem:[#allocation2 + $0x5b8] ss:$12 sps:$4 sm:$0xff]  }
  0xc7   :  { %2880 = vmatprep.subr.bf16.mxu0 %v5042_v16  ;;  %v5118_v16 = vld [vmem:[#allocation2 + $0x5d4] ss:$12 sps:$4 sm:$0xff]   ;;  %v5119_v17 = vld [vmem:[#allocation2 + $0x5d8] ss:$12 sps:$4 sm:$0xff]  }
  0xc9   :  { %4633 = vmatpush3.bf16.msra.mxu1 %v5044_v20  ;;  %v5756_v20 = vld [vmem:[%s5865_s0 + $0x8] sm:$0xff]  ;;  %s5620_s0 = smov [#allocation10]  }
  0xca   :  { %2881 = vmatpush1.bf16.msra.mxu0 %v5040_v19  ;;  %4640 = vmatprep.subr.bf16.mxu1 %v5049_v23  ;;  %v5116_v19 = vld [vmem:[#allocation2 + $0x5d0] ss:$12 sps:$4 sm:$0xff]   ;;  %v5123_v23 = vld [vmem:[#allocation2 + $0x5ec] ss:$12 sps:$4 sm:$0xff]   ;;  %s4126_s19 = sshll.u32 %s5620_s0, 4  ;;  %s4127_s19 = int_to_ptr.vmem [resolvable:$true] %s4126_s19 }
  0xcb   :  { %2891 = vmatprep.subr.bf16.mxu0 %v5048_v21  ;;  %v5120_v21 = vld [vmem:[#allocation2 + $0x518] ss:$12 sps:$4 sm:$0xff]   ;;  %s5579_s20 = scalar_lea.vmem %s4127_s19, 96  ;;  %p5584_p5 = scmp.lt.s32.totalorder %s4127_s19, %s4127_s19 }
  0xcc   :  { %3169 = vmatmul.mubr.bf16.vlgmr.msra.gmra.mrb[8].mxu1 %v5729_v18  ;;  %v5061_v18 = vld [vmem:[#allocation2 + $0x4c8] ss:$12 sps:$4 sm:$0xff]   ;;  %p5580_p4 = scmp.ne.s32.totalorder %s4127_s19, %s5579_s20  ;;  %p5585_p6 = scmp.lt.s32.totalorder %s5579_s20, %s5579_s20 }
  0xcd   :  { %2883 = vmatmul.mubr.bf16.vlgmr.msra.gmra.mrb[0].mxu0 %v5741_v25  ;;  %4641 = vmatpush3.bf16.msra.mxu1 %v5050_v26  ;;  %v5760_v26 = vrot.slane %v5756_v20, %v5709_v49 }
  0xce   :  { %2892 = vmatpush1.bf16.msra.mxu0 %v5046_v24  ;;  %4642 = vmatprep.subr.bf16.mxu1 %v5054_v28  ;;  %v5124_v24 = vld [vmem:[#allocation2 + $0x5f0] ss:$12 sps:$4 sm:$0xff]   ;;  %p5586_p7 = por %p5585_p6, %p5584_p5 }
  0xcf   :  { %2893 = vmatprep.subr.bf16.mxu0 %v5053_v27  ;;  %3208 = vmatprep.mubr.bf16.mxu1 %v5732_v22  ;;  %v5070_v22 = vld [vmem:[#allocation2 + $0x368] ss:$12 sps:$4 sm:$0xff]   ;;  %v5125_v28 = vld [vmem:[#allocation2 + $0x530] ss:$12 sps:$4 sm:$0xff]  }
  0xd0   :  { %2923 = vmatprep.mubr.bf16.mxu0 %v5745_v30  ;;  %v5121_v27 = vld [vmem:[#allocation2 + $0x5e8] ss:$12 sps:$4 sm:$0xff]   ;;  %p5587_p8 = pnand %p5586_p7, %p5580_p4 }
  0xd1   :  { %4643 = vmatpush3.bf16.msra.mxu1 %v5055_v31  ;;  %v5126_v31 = vld [vmem:[#allocation2 + $0x600] ss:$12 sps:$4 sm:$0xff]  }
  0xd2   :  { %2894 = vmatpush1.bf16.msra.mxu0 %v5051_v29  ;;  %4644 = vmatprep.subr.bf16.mxu1 %v5059_v32  ;;  %v5128_v29 = vld [vmem:[#allocation2 + $0x604] ss:$12 sps:$4 sm:$0xff]   ;;  %v652_v32 = vcombine.high %v5741_v25, %v5741_v25 }
  0xd3   :  { %2895 = vmatprep.subr.bf16.mxu0 %v5058_v10  ;;  %v670_v10 = vcombine.high %v5760_v26, %v5760_v26 }
  0xd5   :  { %4645 = vmatpush3.bf16.msra.mxu1 %v5060_v34  ;;  %v5133_v34 = vld [vmem:[#allocation2 + $0x61c] ss:$12 sps:$4 sm:$0xff]  }
  0xd6   :  { %2896 = vmatpush1.bf16.msra.mxu0 %v5056_v33  ;;  %4646 = vmatprep.subr.bf16.mxu1 %v5064_v36  ;;  %v5130_v33 = vld [vmem:[#allocation2 + $0x608] ss:$12 sps:$4 sm:$0xff]   ;;  %v5767_v36 = vrot.slane %v670_v10, %v5709_v49  ;;  %v5196_v10 = vld [vmem:[#allocation2 + $0x750] ss:$12 sps:$4 sm:$0xff]  }
  0xd7   :  { %2897 = vmatprep.subr.bf16.mxu0 %v5063_v35  ;;  %v5134_v35 = vld [vmem:[#allocation2 + $0x6e0] ss:$12 sps:$4 sm:$0xff]  }
  0xd9   :  { %4647 = vmatpush3.bf16.msra.mxu1 %v5065_v37  ;;  %v5135_v37 = vld [vmem:[#allocation2 + $0x620] ss:$12 sps:$4 sm:$0xff]  }
  0xda   :  { %2898 = vmatpush1.bf16.msra.mxu0 %v5061_v18  ;;  %4648 = vmatprep.subr.bf16.mxu1 %v5069_v39  ;;  %v5131_v18 = vld [vmem:[#allocation2 + $0x618] ss:$12 sps:$4 sm:$0xff]   ;;  %v5136_v39 = vld [vmem:[#allocation2 + $0x630] ss:$12 sps:$4 sm:$0xff]  }
  0xdb   :  { %2899 = vmatprep.subr.bf16.mxu0 %v5068_v38  ;;  %v5138_v38 = vld [vmem:[#allocation2 + $0x634] ss:$12 sps:$4 sm:$0xff]  }
  0xdd   :  { %4649 = vmatpush3.bf16.msra.mxu1 %v5070_v22  ;;  %v5143_v22 = vld [vmem:[#allocation2 + $0x64c] ss:$12 sps:$4 sm:$0xff]  }
  0xde   :  { %2900 = vmatpush1.bf16.msra.mxu0 %v5066_v40  ;;  %4650 = vmatprep.subr.bf16.mxu1 %v5074_v43  ;;  %v5140_v40 = vld [vmem:[#allocation2 + $0x638] ss:$12 sps:$4 sm:$0xff]   ;;  %v5141_v43 = vld [vmem:[#allocation2 + $0x648] ss:$12 sps:$4 sm:$0xff]  }
  0xdf   :  { %2901 = vmatprep.subr.bf16.mxu0 %v5073_v41  ;;  %v5144_v41 = vld [vmem:[#allocation2 + $0x710] ss:$12 sps:$4 sm:$0xff]  }
  0xe1   :  { %4651 = vmatpush3.bf16.msra.mxu1 %v5075_v45  ;;  %v5148_v45 = vld [vmem:[#allocation2 + $0x664] ss:$12 sps:$4 sm:$0xff]  }
  0xe2   :  { %2902 = vmatpush1.bf16.msra.mxu0 %v5071_v44  ;;  %4652 = vmatprep.subr.bf16.mxu1 %v5079_v47  ;;  %v5145_v44 = vld [vmem:[#allocation2 + $0x650] ss:$12 sps:$4 sm:$0xff]   ;;  %v5146_v47 = vld [vmem:[#allocation2 + $0x660] ss:$12 sps:$4 sm:$0xff]  }
  0xe3   :  { %2903 = vmatprep.subr.bf16.mxu0 %v5078_v46  ;;  %v5149_v46 = vld [vmem:[#allocation2 + $0x728] ss:$12 sps:$4 sm:$0xff]  }
  0xe5   :  { %4653 = vmatpush3.bf16.msra.mxu1 %v5080_v50  ;;  %v5153_v50 = vld [vmem:[#allocation2 + $0x67c] ss:$12 sps:$4 sm:$0xff]  }
  0xe6   :  { %2904 = vmatpush1.bf16.msra.mxu0 %v5076_v48  ;;  %4654 = vmatprep.subr.bf16.mxu1 %v5084_v52  ;;  %v5150_v48 = vld [vmem:[#allocation2 + $0x668] ss:$12 sps:$4 sm:$0xff]   ;;  %v5151_v52 = vld [vmem:[#allocation2 + $0x678] ss:$12 sps:$4 sm:$0xff]  }
  0xe7   :  { %2905 = vmatprep.subr.bf16.mxu0 %v5083_v51  ;;  %v5154_v51 = vld [vmem:[#allocation2 + $0x740] ss:$12 sps:$4 sm:$0xff]  }
  0xe9   :  { %4655 = vmatpush3.bf16.msra.mxu1 %v5085_v54  ;;  %v5158_v54 = vld [vmem:[#allocation2 + $0x694] ss:$12 sps:$4 sm:$0xff]  }
  0xea   :  { %2906 = vmatpush1.bf16.msra.mxu0 %v5081_v53  ;;  %4662 = vmatprep.subr.bf16.mxu1 %v5089_v56  ;;  %v5155_v53 = vld [vmem:[#allocation2 + $0x680] ss:$12 sps:$4 sm:$0xff]   ;;  %v5156_v56 = vld [vmem:[#allocation2 + $0x690] ss:$12 sps:$4 sm:$0xff]  }
  0xeb   :  { %2907 = vmatprep.subr.bf16.mxu0 %v5088_v55  ;;  %v5159_v55 = vld [vmem:[#allocation2 + $0x758] ss:$12 sps:$4 sm:$0xff]  }
  0xec   :  { %3209 = vmatmul.mubr.bf16.vlgmr.msra.gmra.mrb[12].mxu1 %v5741_v25  ;;  %v5139_v25 = vld [vmem:[#allocation2 + $0x6f8] ss:$12 sps:$4 sm:$0xff]  }
  0xed   :  { %4663 = vmatpush3.bf16.msra.mxu1 %v5090_v58  ;;  %3248 = vmatprep.mubr.bf16.mxu1 %v5745_v30  ;;  %v5129_v30 = vld [vmem:[#allocation2 + $0x6c8] ss:$12 sps:$4 sm:$0xff]   ;;  %v5163_v58 = vld [vmem:[#allocation2 + $0x6ac] ss:$12 sps:$4 sm:$0xff]  }
  0xee   :  { %2908 = vmatpush1.bf16.msra.mxu0 %v5086_v57  ;;  %4664 = vmatprep.subr.bf16.mxu1 %v5094_v60  ;;  %v5160_v57 = vld [vmem:[#allocation2 + $0x698] ss:$12 sps:$4 sm:$0xff]   ;;  %v5161_v60 = vld [vmem:[#allocation2 + $0x6a8] ss:$12 sps:$4 sm:$0xff]  }
  0xef   :  { %2909 = vmatprep.subr.bf16.mxu0 %v5093_v59  ;;  %v5164_v59 = vld [vmem:[#allocation2 + $0x770] ss:$12 sps:$4 sm:$0xff]  }
  0xf1   :  { %4665 = vmatpush3.bf16.msra.mxu1 %v5095_v62  ;;  %v5168_v62 = vld [vmem:[#allocation2 + $0x6c4] ss:$12 sps:$4 sm:$0xff]  }
  0xf2   :  { %2910 = vmatpush1.bf16.msra.mxu0 %v5091_v61  ;;  %4666 = vmatprep.subr.bf16.mxu1 %v5099_v1  ;;  %v5165_v61 = vld [vmem:[#allocation2 + $0x6b0] ss:$12 sps:$4 sm:$0xff]   ;;  %v5166_v1 = vld [vmem:[#allocation2 + $0x6c0] ss:$12 sps:$4 sm:$0xff]  }
  0xf3   :  { %2911 = vmatprep.subr.bf16.mxu0 %v5098_v63  ;;  %v5169_v63 = vld [vmem:[#allocation2 + $0x848] ss:$12 sps:$4 sm:$0xff]  }
  0xf5   :  { %4667 = vmatpush3.bf16.msra.mxu1 %v5100_v3  ;;  %v5170_v3 = vld [vmem:[#allocation2 + $0x788] ss:$12 sps:$4 sm:$0xff]  }
  0xf6   :  { %2912 = vmatpush1.bf16.msra.mxu0 %v5096_v2  ;;  %4668 = vmatprep.subr.bf16.mxu1 %v5104_v5  ;;  %v5773_v2 = vrot.slane %v5760_v26, %v5709_v49  ;;  %v5174_v5 = vld [vmem:[#allocation2 + $0x860] ss:$12 sps:$4 sm:$0xff]  }
  0xf7   :  { %2913 = vmatprep.subr.bf16.mxu0 %v5103_v4  ;;  %v5173_v4 = vld [vmem:[#allocation2 + $0x6dc] ss:$12 sps:$4 sm:$0xff]   ;;  %v5194_v26 = vld [vmem:[#allocation2 + $0x8c0] ss:$12 sps:$4 sm:$0xff]  }
  0xf9   :  { %4669 = vmatpush3.bf16.msra.mxu1 %v5105_v7  ;;  %v5171_v7 = vld [vmem:[#allocation2 + $0x6d8] ss:$12 sps:$4 sm:$0xff]  }
  0xfa   :  { %2914 = vmatpush1.bf16.msra.mxu0 %v5101_v6  ;;  %4670 = vmatprep.subr.bf16.mxu1 %v5109_v8  ;;  %v5777_v6 = vcombine.high %v5767_v36, %v5767_v36  ;;  %v5178_v8 = vld [vmem:[#allocation2 + $0x6f4] ss:$12 sps:$4 sm:$0xff]  }
  0xfb   :  { %2915 = vmatprep.subr.bf16.mxu0 %v5108_v0  ;;  %v5175_v0 = vld [vmem:[#allocation2 + $0x7a0] ss:$12 sps:$4 sm:$0xff]  }
  0xfd   :  { %4671 = vmatpush3.bf16.msra.mxu1 %v5110_v11  ;;  %v5176_v11 = vld [vmem:[#allocation2 + $0x6f0] ss:$12 sps:$4 sm:$0xff]  }
  0xfe   :  { %2916 = vmatpush1.bf16.msra.mxu0 %v5106_v9  ;;  %4672 = vmatprep.subr.bf16.mxu1 %v5114_v13  ;;  %v5179_v9 = vld [vmem:[#allocation2 + $0x878] ss:$12 sps:$4 sm:$0xff]  }
  0xff   :  { %2917 = vmatprep.subr.bf16.mxu0 %v5113_v12  ;;  %v5180_v12 = vld [vmem:[#allocation2 + $0x7b8] ss:$12 sps:$4 sm:$0xff]  }
 0x100   :  { %v5183_v13 = vld [vmem:[#allocation2 + $0x70c] ss:$12 sps:$4 sm:$0xff]  }
 0x101   :  { %4673 = vmatpush3.bf16.msra.mxu1 %v5115_v15  ;;  %v5181_v15 = vld [vmem:[#allocation2 + $0x708] ss:$12 sps:$4 sm:$0xff]  }
 0x102   :  { %2918 = vmatpush1.bf16.msra.mxu0 %v5111_v14  ;;  %4674 = vmatprep.subr.bf16.mxu1 %v5119_v17  ;;  %v5184_v14 = vld [vmem:[#allocation2 + $0x890] ss:$12 sps:$4 sm:$0xff]  }
 0x103   :  { %2919 = vmatprep.subr.bf16.mxu0 %v5118_v16  ;;  %v5185_v16 = vld [vmem:[#allocation2 + $0x7d0] ss:$12 sps:$4 sm:$0xff]  }
 0x104   :  { %v5188_v17 = vld [vmem:[#allocation2 + $0x724] ss:$12 sps:$4 sm:$0xff]  }
 0x105   :  { %4675 = vmatpush3.bf16.msra.mxu1 %v5120_v21  ;;  %v5186_v21 = vld [vmem:[#allocation2 + $0x720] ss:$12 sps:$4 sm:$0xff]  }
 0x106   :  { %2920 = vmatpush1.bf16.msra.mxu0 %v5116_v19  ;;  %4676 = vmatprep.subr.bf16.mxu1 %v5124_v24  ;;  %v5189_v19 = vld [vmem:[#allocation2 + $0x8a8] ss:$12 sps:$4 sm:$0xff]  }
 0x107   :  { %2921 = vmatprep.subr.bf16.mxu0 %v5123_v23  ;;  %v5190_v23 = vld [vmem:[#allocation2 + $0x7e8] ss:$12 sps:$4 sm:$0xff]  }
 0x108   :  { %v5193_v24 = vld [vmem:[#allocation2 + $0x73c] ss:$12 sps:$4 sm:$0xff]  }
 0x109   :  { %4677 = vmatpush3.bf16.msra.mxu1 %v5125_v28  ;;  %v5195_v28 = vld [vmem:[#allocation2 + $0x800] ss:$12 sps:$4 sm:$0xff]  }
 0x10a   :  { %2922 = vmatpush1.bf16.msra.mxu0 %v5121_v27  ;;  %4684 = vmatprep.subr.bf16.mxu1 %v5129_v30  ;;  %v5191_v27 = vld [vmem:[#allocation2 + $0x738] ss:$12 sps:$4 sm:$0xff]  }
 0x10b   :  { %2932 = vmatprep.subr.bf16.mxu0 %v5128_v29  ;;  %v5198_v29 = vld [vmem:[#allocation2 + $0x754] ss:$12 sps:$4 sm:$0xff]   ;;  %v5199_v30 = vld [vmem:[#allocation2 + $0x8d8] ss:$12 sps:$4 sm:$0xff]  }
 0x10c   :  { %3249 = vmatmul.mubr.bf16.vlgmr.msra.gmra.mrb[16].mxu1 %v652_v32 }
 0x10d   :  { %2924 = vmatmul.mubr.bf16.vlgmr.msra.gmra.mrb[0].mxu0 %v652_v32  ;;  %4685 = vmatpush3.bf16.msra.mxu1 %v5130_v33  ;;  %v5200_v32 = vld [vmem:[#allocation2 + $0x818] ss:$12 sps:$4 sm:$0xff]  }
 0x10e   :  { %2933 = vmatpush1.bf16.msra.mxu0 %v5126_v31  ;;  %4686 = vmatprep.subr.bf16.mxu1 %v5134_v35  ;;  %v655_v31 = vcombine.high %v5756_v20, %v5756_v20  ;;  %v5203_v33 = vld [vmem:[#allocation2 + $0x76c] ss:$12 sps:$4 sm:$0xff]   ;;  %v5201_v35 = vld [vmem:[#allocation2 + $0x768] ss:$12 sps:$4 sm:$0xff]  }
 0x10f   :  { %2934 = vmatprep.subr.bf16.mxu0 %v5133_v34  ;;  %3288 = vmatprep.mubr.bf16.mxu1 %v5767_v36  ;;  %v5204_v34 = vld [vmem:[#allocation2 + $0x8f0] ss:$12 sps:$4 sm:$0xff]  }
 0x110   :  { %2964 = vmatprep.mubr.bf16.mxu0 %v5767_v36  ;;  %v5784_v36 = vrot.slane %v655_v31, %v5709_v49  ;;  %v5267_v31 = vld [vmem:[#allocation2 + $0x8a0] ss:$12 sps:$4 sm:$0xff]  }
 0x111   :  { %4687 = vmatpush3.bf16.msra.mxu1 %v5135_v37  ;;  %v5208_v37 = vld [vmem:[#allocation2 + $0x784] ss:$12 sps:$4 sm:$0xff]  }
 0x112   :  { %2935 = vmatpush1.bf16.msra.mxu0 %v5131_v18  ;;  %4688 = vmatprep.subr.bf16.mxu1 %v5139_v25  ;;  %v5205_v18 = vld [vmem:[#allocation2 + $0x830] ss:$12 sps:$4 sm:$0xff]   ;;  %v671_v20 = vcombine.high %v5784_v36, %v5784_v36  ;;  %v5206_v25 = vld [vmem:[#allocation2 + $0x780] ss:$12 sps:$4 sm:$0xff]  }
 0x113   :  { %2936 = vmatprep.subr.bf16.mxu0 %v5138_v38  ;;  %v5209_v38 = vld [vmem:[#allocation2 + $0x9c8] ss:$12 sps:$4 sm:$0xff]  }
 0x115   :  { %4689 = vmatpush3.bf16.msra.mxu1 %v5140_v40  ;;  %v5210_v40 = vld [vmem:[#allocation2 + $0x908] ss:$12 sps:$4 sm:$0xff]  }
 0x116   :  { %2937 = vmatpush1.bf16.msra.mxu0 %v5136_v39  ;;  %4690 = vmatprep.subr.bf16.mxu1 %v5144_v41  ;;  %v5790_v39 = vcombine.high %v5773_v2, %v5773_v2  ;;  %v5214_v41 = vld [vmem:[#allocation2 + $0x9e0] ss:$12 sps:$4 sm:$0xff]  }
 0x117   :  { %2938 = vmatprep.subr.bf16.mxu0 %v5143_v22  ;;  %v5213_v22 = vld [vmem:[#allocation2 + $0x79c] ss:$12 sps:$4 sm:$0xff]  }
 0x119   :  { %4691 = vmatpush3.bf16.msra.mxu1 %v5145_v44  ;;  %v5211_v44 = vld [vmem:[#allocation2 + $0x798] ss:$12 sps:$4 sm:$0xff]  }
 0x11a   :  { %2939 = vmatpush1.bf16.msra.mxu0 %v5141_v43  ;;  %4692 = vmatprep.subr.bf16.mxu1 %v5149_v46  ;;  %v5793_v43 = vrot.slane %v671_v20, %v5709_v49  ;;  %v5218_v46 = vld [vmem:[#allocation2 + $0x7b4] ss:$12 sps:$4 sm:$0xff]  }
 0x11b   :  { %2940 = vmatprep.subr.bf16.mxu0 %v5148_v45  ;;  %v5215_v45 = vld [vmem:[#allocation2 + $0x920] ss:$12 sps:$4 sm:$0xff]  }
 0x11c   :  { %v5279_v20 = vld [vmem:[#allocation2 + $0x8d4] ss:$12 sps:$4 sm:$0xff]  }
 0x11d   :  { %4693 = vmatpush3.bf16.msra.mxu1 %v5150_v48  ;;  %v5216_v48 = vld [vmem:[#allocation2 + $0x7b0] ss:$12 sps:$4 sm:$0xff]  }
 0x11e   :  { %2941 = vmatpush1.bf16.msra.mxu0 %v5146_v47  ;;  %4694 = vmatprep.subr.bf16.mxu1 %v5154_v51  ;;  %v5219_v47 = vld [vmem:[#allocation2 + $0x9f8] ss:$12 sps:$4 sm:$0xff]  }
 0x11f   :  { %2942 = vmatprep.subr.bf16.mxu0 %v5153_v50  ;;  %v5220_v50 = vld [vmem:[#allocation2 + $0x938] ss:$12 sps:$4 sm:$0xff]  }
 0x120   :  { %v5223_v51 = vld [vmem:[#allocation2 + $0x7cc] ss:$12 sps:$4 sm:$0xff]  }
 0x121   :  { %4695 = vmatpush3.bf16.msra.mxu1 %v5155_v53  ;;  %v5221_v53 = vld [vmem:[#allocation2 + $0x7c8] ss:$12 sps:$4 sm:$0xff]  }
 0x122   :  { %2943 = vmatpush1.bf16.msra.mxu0 %v5151_v52  ;;  %4696 = vmatprep.subr.bf16.mxu1 %v5159_v55  ;;  %v5224_v52 = vld [vmem:[#allocation2 + $0xa10] ss:$12 sps:$4 sm:$0xff]  }
 0x123   :  { %2944 = vmatprep.subr.bf16.mxu0 %v5158_v54  ;;  %v5225_v54 = vld [vmem:[#allocation2 + $0x950] ss:$12 sps:$4 sm:$0xff]  }
 0x124   :  { %v5228_v55 = vld [vmem:[#allocation2 + $0x7e4] ss:$12 sps:$4 sm:$0xff]  }
 0x125   :  { %4697 = vmatpush3.bf16.msra.mxu1 %v5160_v57  ;;  %v5226_v57 = vld [vmem:[#allocation2 + $0x7e0] ss:$12 sps:$4 sm:$0xff]  }
 0x126   :  { %2945 = vmatpush1.bf16.msra.mxu0 %v5156_v56  ;;  %4698 = vmatprep.subr.bf16.mxu1 %v5164_v59  ;;  %v5229_v56 = vld [vmem:[#allocation2 + $0xa28] ss:$12 sps:$4 sm:$0xff]  }
 0x127   :  { %2946 = vmatprep.subr.bf16.mxu0 %v5163_v58  ;;  %v5230_v58 = vld [vmem:[#allocation2 + $0x968] ss:$12 sps:$4 sm:$0xff]  }
 0x128   :  { %v5233_v59 = vld [vmem:[#allocation2 + $0x7fc] ss:$12 sps:$4 sm:$0xff]  }
 0x129   :  { %4699 = vmatpush3.bf16.msra.mxu1 %v5165_v61  ;;  %v5231_v61 = vld [vmem:[#allocation2 + $0x7f8] ss:$12 sps:$4 sm:$0xff]  }
 0x12a   :  { %2947 = vmatpush1.bf16.msra.mxu0 %v5161_v60  ;;  %4706 = vmatprep.subr.bf16.mxu1 %v5169_v63  ;;  %v5234_v60 = vld [vmem:[#allocation2 + $0xa40] ss:$12 sps:$4 sm:$0xff]  }
 0x12b   :  { %2948 = vmatprep.subr.bf16.mxu0 %v5168_v62  ;;  %v5235_v62 = vld [vmem:[#allocation2 + $0x980] ss:$12 sps:$4 sm:$0xff]  }
 0x12c   :  { %3289 = vmatmul.mubr.bf16.vlgmr.msra.gmra.mrb[20].mxu1 %v5773_v2  ;;  %v5238_v63 = vld [vmem:[#allocation2 + $0x814] ss:$12 sps:$4 sm:$0xff]  }
 0x12d   :  { %4707 = vmatpush3.bf16.msra.mxu1 %v5170_v3  ;;  %3328 = vmatprep.mubr.bf16.mxu1 %v5777_v6  ;;  %v5240_v3 = vld [vmem:[#allocation2 + $0x998] ss:$12 sps:$4 sm:$0xff]  }
 0x12e   :  { %2949 = vmatpush1.bf16.msra.mxu0 %v5166_v1  ;;  %4708 = vmatprep.subr.bf16.mxu1 %v5174_v5  ;;  %v5239_v1 = vld [vmem:[#allocation2 + $0xa58] ss:$12 sps:$4 sm:$0xff]   ;;  %v5244_v5 = vld [vmem:[#allocation2 + $0xa70] ss:$12 sps:$4 sm:$0xff]  }
 0x12f   :  { %2950 = vmatprep.subr.bf16.mxu0 %v5173_v4  ;;  %v5243_v4 = vld [vmem:[#allocation2 + $0x82c] ss:$12 sps:$4 sm:$0xff]  }
 0x131   :  { %4709 = vmatpush3.bf16.msra.mxu1 %v5175_v0  ;;  %v5249_v0 = vld [vmem:[#allocation2 + $0x844] ss:$12 sps:$4 sm:$0xff]  }
 0x132   :  { %2951 = vmatpush1.bf16.msra.mxu0 %v5171_v7  ;;  %4710 = vmatprep.subr.bf16.mxu1 %v5179_v9  ;;  %v5245_v7 = vld [vmem:[#allocation2 + $0x9b0] ss:$12 sps:$4 sm:$0xff]   ;;  %v5801_v9 = vrot.slane %v5784_v36, %v5709_v49  ;;  %v5259_v49 = vld [vmem:[#allocation2 + $0x874] ss:$12 sps:$4 sm:$0xff]   ;;  %v5272_v36 = vld [vmem:[#allocation2 + $0x8b8] ss:$12 sps:$4 sm:$0xff]  }
 0x133   :  { %2952 = vmatprep.subr.bf16.mxu0 %v5178_v8  ;;  %v5250_v8 = vld [vmem:[#allocation2 + $0xb48] ss:$12 sps:$4 sm:$0xff]  }
 0x135   :  { %4711 = vmatpush3.bf16.msra.mxu1 %v5180_v12  ;;  %v5251_v12 = vld [vmem:[#allocation2 + $0xa88] ss:$12 sps:$4 sm:$0xff]  }
 0x136   :  { %2953 = vmatpush1.bf16.msra.mxu0 %v5176_v11  ;;  %4712 = vmatprep.subr.bf16.mxu1 %v5184_v14  ;;  %v5247_v11 = vld [vmem:[#allocation2 + $0x840] ss:$12 sps:$4 sm:$0xff]  }
 0x137   :  { %2954 = vmatprep.subr.bf16.mxu0 %v5183_v13  ;;  %v5254_v13 = vld [vmem:[#allocation2 + $0x85c] ss:$12 sps:$4 sm:$0xff]   ;;  %v5255_v14 = vld [vmem:[#allocation2 + $0xb60] ss:$12 sps:$4 sm:$0xff]  }
 0x139   :  { %4713 = vmatpush3.bf16.msra.mxu1 %v5185_v16  ;;  %v5256_v16 = vld [vmem:[#allocation2 + $0xaa0] ss:$12 sps:$4 sm:$0xff]  }
 0x13a   :  { %2955 = vmatpush1.bf16.msra.mxu0 %v5181_v15  ;;  %4714 = vmatprep.subr.bf16.mxu1 %v5189_v19  ;;  %v5252_v15 = vld [vmem:[#allocation2 + $0x858] ss:$12 sps:$4 sm:$0xff]  }
 0x13b   :  { %2956 = vmatprep.subr.bf16.mxu0 %v5188_v17  ;;  %v5805_v17 = vcombine.high %v5793_v43, %v5793_v43  ;;  %v5260_v19 = vld [vmem:[#allocation2 + $0xb78] ss:$12 sps:$4 sm:$0xff]  }
 0x13d   :  { %4715 = vmatpush3.bf16.msra.mxu1 %v5190_v23  ;;  %v5261_v23 = vld [vmem:[#allocation2 + $0xab8] ss:$12 sps:$4 sm:$0xff]  }
 0x13e   :  { %2957 = vmatpush1.bf16.msra.mxu0 %v5186_v21  ;;  %4716 = vmatprep.subr.bf16.mxu1 %v5194_v26  ;;  %v5257_v21 = vld [vmem:[#allocation2 + $0x870] ss:$12 sps:$4 sm:$0xff]  }
 0x13f   :  { %2958 = vmatprep.subr.bf16.mxu0 %v5193_v24  ;;  %v5264_v24 = vld [vmem:[#allocation2 + $0x88c] ss:$12 sps:$4 sm:$0xff]   ;;  %v5265_v26 = vld [vmem:[#allocation2 + $0xb90] ss:$12 sps:$4 sm:$0xff]  }
 0x141   :  { %4717 = vmatpush3.bf16.msra.mxu1 %v5195_v28  ;;  %v5266_v28 = vld [vmem:[#allocation2 + $0xad0] ss:$12 sps:$4 sm:$0xff]  }
 0x142   :  { %2959 = vmatpush1.bf16.msra.mxu0 %v5191_v27  ;;  %4718 = vmatprep.subr.bf16.mxu1 %v5199_v30  ;;  %v5262_v27 = vld [vmem:[#allocation2 + $0x888] ss:$12 sps:$4 sm:$0xff]  }
 0x143   :  { %2960 = vmatprep.subr.bf16.mxu0 %v5198_v29  ;;  %v5269_v29 = vld [vmem:[#allocation2 + $0x8a4] ss:$12 sps:$4 sm:$0xff]   ;;  %v5270_v30 = vld [vmem:[#allocation2 + $0xba8] ss:$12 sps:$4 sm:$0xff]  }
 0x145   :  { %4719 = vmatpush3.bf16.msra.mxu1 %v5200_v32  ;;  %v5274_v32 = vld [vmem:[#allocation2 + $0x8bc] ss:$12 sps:$4 sm:$0xff]  }
 0x146   :  { %2961 = vmatpush1.bf16.msra.mxu0 %v5196_v10  ;;  %4720 = vmatprep.subr.bf16.mxu1 %v5204_v34  ;;  %v5271_v10 = vld [vmem:[#allocation2 + $0xae8] ss:$12 sps:$4 sm:$0xff]   ;;  %v5275_v34 = vld [vmem:[#allocation2 + $0xbc0] ss:$12 sps:$4 sm:$0xff]  }
 0x147   :  { %2962 = vmatprep.subr.bf16.mxu0 %v5203_v33 }
 0x149   :  { %4721 = vmatpush3.bf16.msra.mxu1 %v5205_v18  ;;  %v5276_v18 = vld [vmem:[#allocation2 + $0xb00] ss:$12 sps:$4 sm:$0xff]  }
 0x14a   :  { %2963 = vmatpush1.bf16.msra.mxu0 %v5201_v35  ;;  %4728 = vmatprep.subr.bf16.mxu1 %v5209_v38 }
 0x14b   :  { %2973 = vmatprep.subr.bf16.mxu0 %v5208_v37 }
 0x14c   :  { %3329 = vmatmul.mubr.bf16.vlgmr.msra.gmra.mrb[24].mxu1 %v5790_v39 }
 0x14d   :  { %2965 = vmatmul.mubr.bf16.vlgmr.msra.gmra.mrb[0].mxu0 %v5773_v2  ;;  %4729 = vmatpush3.bf16.msra.mxu1 %v5210_v40  ;;  %v5236_v2 = vld [vmem:[#allocation2 + $0x810] ss:$12 sps:$4 sm:$0xff]  }
 0x14e   :  { %2974 = vmatpush1.bf16.msra.mxu0 %v5206_v25  ;;  %4730 = vmatprep.subr.bf16.mxu1 %v5214_v41  ;;  %v5280_v25 = vld [vmem:[#allocation2 + $0xbd8] ss:$12 sps:$4 sm:$0xff]   ;;  %v5277_v40 = vld [vmem:[#allocation2 + $0x8d0] ss:$12 sps:$4 sm:$0xff]  }
 0x14f   :  { %2975 = vmatprep.subr.bf16.mxu0 %v5213_v22  ;;  %3368 = vmatprep.mubr.bf16.mxu1 %v5793_v43  ;;  %v5281_v22 = vld [vmem:[#allocation2 + $0xb18] ss:$12 sps:$4 sm:$0xff]  }
 0x150   :  { %3005 = vmatprep.mubr.bf16.mxu0 %v5777_v6  ;;  %v5241_v6 = vld [vmem:[#allocation2 + $0x828] ss:$12 sps:$4 sm:$0xff]   ;;  %v5284_v41 = vld [vmem:[#allocation2 + $0x8ec] ss:$12 sps:$4 sm:$0xff]  }
 0x151   :  { %4731 = vmatpush3.bf16.msra.mxu1 %v5215_v45  ;;  %v5282_v45 = vld [vmem:[#allocation2 + $0x8e8] ss:$12 sps:$4 sm:$0xff]  }
 0x152   :  { %2976 = vmatpush1.bf16.msra.mxu0 %v5211_v44  ;;  %4732 = vmatprep.subr.bf16.mxu1 %v5219_v47  ;;  %v5285_v44 = vld [vmem:[#allocation2 + $0xbf0] ss:$12 sps:$4 sm:$0xff]  }
 0x153   :  { %2977 = vmatprep.subr.bf16.mxu0 %v5218_v46  ;;  %v5286_v46 = vld [vmem:[#allocation2 + $0xb30] ss:$12 sps:$4 sm:$0xff]  }
 0x154   :  { %v5289_v47 = vld [vmem:[#allocation2 + $0x904] ss:$12 sps:$4 sm:$0xff]  }
 0x155   :  { %4733 = vmatpush3.bf16.msra.mxu1 %v5220_v50  ;;  %v5815_v50 = vcombine.high %v5801_v9, %v5801_v9 }
 0x156   :  { %2978 = vmatpush1.bf16.msra.mxu0 %v5216_v48  ;;  %4734 = vmatprep.subr.bf16.mxu1 %v5224_v52  ;;  %v5287_v48 = vld [vmem:[#allocation2 + $0x900] ss:$12 sps:$4 sm:$0xff]   ;;  %v5290_v52 = vld [vmem:[#allocation2 + $0x918] ss:$12 sps:$4 sm:$0xff]  }
 0x157   :  { %2979 = vmatprep.subr.bf16.mxu0 %v5223_v51  ;;  %v5292_v51 = vld [vmem:[#allocation2 + $0x91c] ss:$12 sps:$4 sm:$0xff]  }
 0x159   :  { %4735 = vmatpush3.bf16.msra.mxu1 %v5225_v54 }
 0x15a   :  { %2980 = vmatpush1.bf16.msra.mxu0 %v5221_v53  ;;  %4736 = vmatprep.subr.bf16.mxu1 %v5229_v56  ;;  %v5295_v53 = vld [vmem:[#allocation2 + $0x934] ss:$12 sps:$4 sm:$0xff]  }
 0x15b   :  { %2981 = vmatprep.subr.bf16.mxu0 %v5228_v55 }
 0x15d   :  { %4737 = vmatpush3.bf16.msra.mxu1 %v5230_v58  ;;  %v5293_v58 = vld [vmem:[#allocation2 + $0x930] ss:$12 sps:$4 sm:$0xff]  }
 0x15e   :  { %2982 = vmatpush1.bf16.msra.mxu0 %v5226_v57  ;;  %4738 = vmatprep.subr.bf16.mxu1 %v5234_v60  ;;  %v5298_v60 = vld [vmem:[#allocation2 + $0x94c] ss:$12 sps:$4 sm:$0xff]  }
 0x15f   :  { %2983 = vmatprep.subr.bf16.mxu0 %v5233_v59  ;;  %v5809_v33 = vpop.f32.mrb[0].mxu1 }
 0x160   :  { %v5811_v35 = vpop.f32.mrb[1].mxu1 }
 0x161   :  { %4739 = vmatpush3.bf16.msra.mxu1 %v5235_v62  ;;  %v2806_v37 = vpop.f32.mrb[2].mxu1  ;;  %v5301_v62 = vld [vmem:[#allocation2 + $0x964] ss:$12 sps:$4 sm:$0xff]  }
 0x162   :  { %2984 = vmatpush1.bf16.msra.mxu0 %v5231_v61  ;;  %4740 = vmatprep.subr.bf16.mxu1 %v5239_v1  ;;  %v2807_v38 = vpop.f32.mrb[3].mxu1  ;;  %v5296_v61 = vld [vmem:[#allocation2 + $0x948] ss:$12 sps:$4 sm:$0xff]  }
 0x163   :  { %2985 = vmatprep.subr.bf16.mxu0 %v5238_v63  ;;  %v5299_v63 = vld [vmem:[#allocation2 + $0x960] ss:$12 sps:$4 sm:$0xff]   ;;  %v5304_v1 = vld [vmem:[#allocation2 + $0x97c] ss:$12 sps:$4 sm:$0xff]  }
 0x164   :  { %v5334_v38 = vld [vmem:[#allocation2 + $0xa6c] ss:$12 sps:$4 sm:$0xff]  }
 0x165   :  { %4741 = vmatpush3.bf16.msra.mxu1 %v5240_v3  ;;  %v5302_v3 = vld [vmem:[#allocation2 + $0x978] ss:$12 sps:$4 sm:$0xff]  }
 0x166   :  { %2986 = vmatpush1.bf16.msra.mxu0 %v5236_v2  ;;  %4742 = vmatprep.subr.bf16.mxu1 %v5244_v5 }
 0x167   :  { %2987 = vmatprep.subr.bf16.mxu0 %v5243_v4  ;;  %v5307_v4 = vld [vmem:[#allocation2 + $0x994] ss:$12 sps:$4 sm:$0xff]  }
 0x169   :  { %4743 = vmatpush3.bf16.msra.mxu1 %v5245_v7 }
 0x16a   :  { %2988 = vmatpush1.bf16.msra.mxu0 %v5241_v6  ;;  %4750 = vmatprep.subr.bf16.mxu1 %v5250_v8 }
 0x16b   :  { %2989 = vmatprep.subr.bf16.mxu0 %v5249_v0  ;;  %v5305_v0 = vld [vmem:[#allocation2 + $0x990] ss:$12 sps:$4 sm:$0xff]  }
 0x16c   :  { %3369 = vmatmul.mubr.bf16.vlgmr.msra.gmra.mrb[28].mxu1 %v5801_v9 }
 0x16d   :  { %4751 = vmatpush3.bf16.msra.mxu1 %v5251_v12  ;;  %3408 = vmatprep.mubr.bf16.mxu1 %v5805_v17  ;;  %v5310_v12 = vld [vmem:[#allocation2 + $0x9ac] ss:$12 sps:$4 sm:$0xff]  }
 0x16e   :  { %2990 = vmatpush1.bf16.msra.mxu0 %v5247_v11  ;;  %4752 = vmatprep.subr.bf16.mxu1 %v5255_v14 }
 0x16f   :  { %2991 = vmatprep.subr.bf16.mxu0 %v5254_v13 }
 0x171   :  { %4753 = vmatpush3.bf16.msra.mxu1 %v5256_v16  ;;  %v5313_v16 = vld [vmem:[#allocation2 + $0x9c4] ss:$12 sps:$4 sm:$0xff]  }
 0x172   :  { %2992 = vmatpush1.bf16.msra.mxu0 %v5252_v15  ;;  %4754 = vmatprep.subr.bf16.mxu1 %v5260_v19  ;;  %v5308_v15 = vld [vmem:[#allocation2 + $0x9a8] ss:$12 sps:$4 sm:$0xff]  }
 0x173   :  { %2993 = vmatprep.subr.bf16.mxu0 %v5259_v49  ;;  %v5311_v49 = vld [vmem:[#allocation2 + $0x9c0] ss:$12 sps:$4 sm:$0xff]   ;;  %v5316_v19 = vld [vmem:[#allocation2 + $0x9dc] ss:$12 sps:$4 sm:$0xff]  }
 0x175   :  { %4755 = vmatpush3.bf16.msra.mxu1 %v5261_v23  ;;  %v5319_v23 = vld [vmem:[#allocation2 + $0x9f4] ss:$12 sps:$4 sm:$0xff]  }
 0x176   :  { %2994 = vmatpush1.bf16.msra.mxu0 %v5257_v21  ;;  %4756 = vmatprep.subr.bf16.mxu1 %v5265_v26  ;;  %v5314_v21 = vld [vmem:[#allocation2 + $0x9d8] ss:$12 sps:$4 sm:$0xff]  }
 0x177   :  { %2995 = vmatprep.subr.bf16.mxu0 %v5264_v24  ;;  %v5317_v24 = vld [vmem:[#allocation2 + $0x9f0] ss:$12 sps:$4 sm:$0xff]   ;;  %v5322_v26 = vld [vmem:[#allocation2 + $0xa0c] ss:$12 sps:$4 sm:$0xff]  }
 0x179   :  { %4757 = vmatpush3.bf16.msra.mxu1 %v5266_v28  ;;  %v5325_v28 = vld [vmem:[#allocation2 + $0xa24] ss:$12 sps:$4 sm:$0xff]  }
 0x17a   :  { %2996 = vmatpush1.bf16.msra.mxu0 %v5262_v27  ;;  %4758 = vmatprep.subr.bf16.mxu1 %v5270_v30  ;;  %v5320_v27 = vld [vmem:[#allocation2 + $0xa08] ss:$12 sps:$4 sm:$0xff]  }
 0x17b   :  { %2997 = vmatprep.subr.bf16.mxu0 %v5269_v29  ;;  %v5323_v29 = vld [vmem:[#allocation2 + $0xa20] ss:$12 sps:$4 sm:$0xff]   ;;  %v5328_v30 = vld [vmem:[#allocation2 + $0xa3c] ss:$12 sps:$4 sm:$0xff]  }
 0x17d   :  { %4759 = vmatpush3.bf16.msra.mxu1 %v5271_v10  ;;  %v5331_v10 = vld [vmem:[#allocation2 + $0xa54] ss:$12 sps:$4 sm:$0xff]  }
 0x17e   :  { %2998 = vmatpush1.bf16.msra.mxu0 %v5267_v31  ;;  %4760 = vmatprep.subr.bf16.mxu1 %v5275_v34  ;;  %v5326_v31 = vld [vmem:[#allocation2 + $0xa38] ss:$12 sps:$4 sm:$0xff]  }
 0x17f   :  { %2999 = vmatprep.subr.bf16.mxu0 %v5274_v32  ;;  %v4612_v54 = vpop.f32.mrb[4].mxu1 }
 0x180   :  { %v4613_v55 = vpop.f32.mrb[5].mxu1 }
 0x181   :  { %4761 = vmatpush3.bf16.msra.mxu1 %v5276_v18  ;;  %v4614_v56 = vadd.f32 %v4613_v55, %v4612_v54  ;;  %v4615_v57 = vpop.f32.mrb[6].mxu1  ;;  %v5352_v54 = vld [vmem:[#allocation2 + $0xafc] ss:$12 sps:$4 sm:$0xff]   ;;  %v5355_v55 = vld [vmem:[#allocation2 + $0xb14] ss:$12 sps:$4 sm:$0xff]  }
 0x182   :  { %3000 = vmatpush1.bf16.msra.mxu0 %v5272_v36  ;;  %4762 = vmatprep.subr.bf16.mxu1 %v5280_v25  ;;  %v4616_v59 = vpop.f32.mrb[7].mxu1  ;;  %v5329_v36 = vld [vmem:[#allocation2 + $0xa50] ss:$12 sps:$4 sm:$0xff]  }
 0x183   :  { %3001 = vmatprep.subr.bf16.mxu0 %v5279_v20  ;;  %v5353_v57 = vld [vmem:[#allocation2 + $0xb10] ss:$12 sps:$4 sm:$0xff]  }
 0x185   :  { %4763 = vmatpush3.bf16.msra.mxu1 %v5281_v22  ;;  %v5337_v22 = vld [vmem:[#allocation2 + $0xa84] ss:$12 sps:$4 sm:$0xff]  }
 0x186   :  { %3002 = vmatpush1.bf16.msra.mxu0 %v5277_v40  ;;  %4764 = vmatprep.subr.bf16.mxu1 %v5285_v44  ;;  %v5332_v40 = vld [vmem:[#allocation2 + $0xa68] ss:$12 sps:$4 sm:$0xff]  }
 0x187   :  { %3003 = vmatprep.subr.bf16.mxu0 %v5284_v41  ;;  %v5335_v41 = vld [vmem:[#allocation2 + $0xa80] ss:$12 sps:$4 sm:$0xff]   ;;  %v5340_v44 = vld [vmem:[#allocation2 + $0xa9c] ss:$12 sps:$4 sm:$0xff]  }
 0x189   :  { %4765 = vmatpush3.bf16.msra.mxu1 %v5286_v46  ;;  %v5343_v46 = vld [vmem:[#allocation2 + $0xab4] ss:$12 sps:$4 sm:$0xff]  }
 0x18a   :  { %3004 = vmatpush1.bf16.msra.mxu0 %v5282_v45  ;;  %v5338_v45 = vld [vmem:[#allocation2 + $0xa98] ss:$12 sps:$4 sm:$0xff]  }
 0x18b   :  { %3014 = vmatprep.subr.bf16.mxu0 %v5289_v47  ;;  %v5341_v47 = vld [vmem:[#allocation2 + $0xab0] ss:$12 sps:$4 sm:$0xff]  }
 0x18c   :  { %3409 = vmatmul.mubr.bf16.vlgmr.msra.gmra.mrb[32].mxu1 %v5815_v50 }
 0x18d   :  { %3006 = vmatmul.mubr.bf16.vlgmr.msra.gmra.mrb[0].mxu0 %v5790_v39  ;;  %v599_v39 = vsub.s32 2, %v5706_v42 }
 0x18e   :  { %3015 = vmatpush1.bf16.msra.mxu0 %v5287_v48  ;;  %3046 = vmatprep.mubr.bf16.mxu0 %v5793_v43  ;;  %v5821_v43 = vld [vmem:[#allocation5] sm:$0x7]  ;;  %v5346_v48 = vld [vmem:[#allocation2 + $0xacc] ss:$12 sps:$4 sm:$0xff]  }
 0x18f   :  { %3016 = vmatprep.subr.bf16.mxu0 %v5292_v51  ;;  %v600_v2 = vrot.slane %v5821_v43, %v599_v39  ;;  %v5344_v51 = vld [vmem:[#allocation2 + $0xac8] ss:$12 sps:$4 sm:$0xff]  }
 0x191   :  { %v3131_v5 = vadd.f32 %v4614_v56, %v600_v2  ;;  %v5383_v2 = vld [vmem:[#allocation7] ss:$12 sps:$4 sm:$0xff]  }
 0x192   :  { %3017 = vmatpush1.bf16.msra.mxu0 %v5290_v52  ;;  %v5349_v52 = vld [vmem:[#allocation2 + $0xae4] ss:$12 sps:$4 sm:$0xff]  }
 0x193   :  { %3018 = vmatprep.subr.bf16.mxu0 %v5295_v53  ;;  %v5347_v53 = vld [vmem:[#allocation2 + $0xae0] ss:$12 sps:$4 sm:$0xff]  }
 0x196   :  { %3019 = vmatpush1.bf16.msra.mxu0 %v5293_v58 }
 0x197   :  { %3020 = vmatprep.subr.bf16.mxu0 %v5298_v60  ;;  %v5358_v60 = vld [vmem:[#allocation2 + $0xb2c] ss:$12 sps:$4 sm:$0xff]  }
 0x19a   :  { %3021 = vmatpush1.bf16.msra.mxu0 %v5296_v61 }
 0x19b   :  { %3022 = vmatprep.subr.bf16.mxu0 %v5301_v62 }
 0x19e   :  { %3023 = vmatpush1.bf16.msra.mxu0 %v5299_v63  ;;  %v5356_v63 = vld [vmem:[#allocation2 + $0xb28] ss:$12 sps:$4 sm:$0xff]  }
 0x19f   :  { %3024 = vmatprep.subr.bf16.mxu0 %v5304_v1  ;;  %v4634_v6 = vpop.f32.mrb[8].mxu1  ;;  %v5361_v1 = vld [vmem:[#allocation2 + $0xb44] ss:$12 sps:$4 sm:$0xff]  }
 0x1a0   :  { %v4635_v7 = vpop.f32.mrb[9].mxu1 }
 0x1a1   :  { %v4636_v8 = vadd.f32 %v4635_v7, %v4634_v6  ;;  %v4637_v11 = vpop.f32.mrb[10].mxu1  ;;  %v5364_v6 = vld [vmem:[#allocation2 + $0xb5c] ss:$12 sps:$4 sm:$0xff]  }
 0x1a2   :  { %3025 = vmatpush1.bf16.msra.mxu0 %v5302_v3  ;;  %v4638_v13 = vpop.f32.mrb[11].mxu1  ;;  %v5385_v3 = vld [vmem:[#allocation7 + $0x4] ss:$12 sps:$4 sm:$0xff]  }
 0x1a3   :  { %3026 = vmatprep.subr.bf16.mxu0 %v5307_v4  ;;  %v3171_v14 = vadd.f32 %v4636_v8, %v3131_v5  ;;  %v5388_v4 = vld [vmem:[#allocation7 + $0x1c] ss:$12 sps:$4 sm:$0xff]   ;;  %3919 = vmatprep.subr.bf16.mxu1 %v5385_v3  ;;  %v5386_v7 = vld [vmem:[#allocation7 + $0x18] ss:$12 sps:$4 sm:$0xff]   ;;  %v5362_v8 = vld [vmem:[#allocation2 + $0xb58] ss:$12 sps:$4 sm:$0xff]  }
 0x1a4   :  { %v5359_v5 = vld [vmem:[#allocation2 + $0xb40] ss:$12 sps:$4 sm:$0xff]   ;;  %3920 = vmatpush1.bf16.msra.mxu1 %v5383_v2  ;;  %v5394_v13 = vld [vmem:[#allocation7 + $0x4c] ss:$12 sps:$4 sm:$0xff]  }
 0x1a5   :  { %3921 = vmatprep.subr.bf16.mxu1 %v5388_v4  ;;  %v5367_v11 = vld [vmem:[#allocation2 + $0xb74] ss:$12 sps:$4 sm:$0xff]   ;;  %v5427_v4 = vld [vmem:[#allocation7 + $0x154] ss:$12 sps:$4 sm:$0xff]  }
 0x1a6   :  { %3027 = vmatpush1.bf16.msra.mxu0 %v5305_v0  ;;  %v5391_v0 = vld [vmem:[#allocation7 + $0x34] ss:$12 sps:$4 sm:$0xff]  }
 0x1a7   :  { %3028 = vmatprep.subr.bf16.mxu0 %v5310_v12  ;;  %v5389_v12 = vld [vmem:[#allocation7 + $0x30] ss:$12 sps:$4 sm:$0xff]  }
 0x1a8   :  { %3922 = vmatpush1.bf16.msra.mxu1 %v5386_v7 }
 0x1a9   :  { %3923 = vmatprep.subr.bf16.mxu1 %v5391_v0 }
 0x1aa   :  { %3029 = vmatpush1.bf16.msra.mxu0 %v5308_v15  ;;  %v5370_v15 = vld [vmem:[#allocation2 + $0xb8c] ss:$12 sps:$4 sm:$0xff]  }
 0x1ab   :  { %3030 = vmatprep.subr.bf16.mxu0 %v5313_v16  ;;  %v5392_v16 = vld [vmem:[#allocation7 + $0x48] ss:$12 sps:$4 sm:$0xff]  }
 0x1ac   :  { %3924 = vmatpush1.bf16.msra.mxu1 %v5389_v12  ;;  %v5428_v12 = vld [vmem:[#allocation7 + $0x168] ss:$12 sps:$4 sm:$0xff]  }
 0x1ad   :  { %3925 = vmatprep.subr.bf16.mxu1 %v5394_v13 }
 0x1ae   :  { %3031 = vmatpush1.bf16.msra.mxu0 %v5311_v49  ;;  %v5397_v49 = vld [vmem:[#allocation7 + $0x64] ss:$12 sps:$4 sm:$0xff]  }
 0x1af   :  { %3032 = vmatprep.subr.bf16.mxu0 %v5316_v19  ;;  %v5368_v19 = vld [vmem:[#allocation2 + $0xb88] ss:$12 sps:$4 sm:$0xff]  }
 0x1b0   :  { %3926 = vmatpush1.bf16.msra.mxu1 %v5392_v16  ;;  %v591_v16 = vsub.s32 0, %v5706_v42 }
 0x1b1   :  { %3927 = vmatprep.subr.bf16.mxu1 %v5397_v49  ;;  %v595_v49 = vsub.s32 1, %v5706_v42 }
 0x1b2   :  { %3033 = vmatpush1.bf16.msra.mxu0 %v5314_v21  ;;  %v5373_v21 = vld [vmem:[#allocation2 + $0xba4] ss:$12 sps:$4 sm:$0xff]  }
 0x1b3   :  { %3034 = vmatprep.subr.bf16.mxu0 %v5319_v23  ;;  %v5395_v23 = vld [vmem:[#allocation7 + $0x60] ss:$12 sps:$4 sm:$0xff]  }
 0x1b4   :  { %3928 = vmatpush1.bf16.msra.mxu1 %v5395_v23 }
 0x1b6   :  { %3035 = vmatpush1.bf16.msra.mxu0 %v5317_v24  ;;  %v5400_v24 = vld [vmem:[#allocation7 + $0x7c] ss:$12 sps:$4 sm:$0xff]  }
 0x1b7   :  { %3036 = vmatprep.subr.bf16.mxu0 %v5322_v26  ;;  %v5371_v26 = vld [vmem:[#allocation2 + $0xba0] ss:$12 sps:$4 sm:$0xff]   ;;  %3929 = vmatprep.subr.bf16.mxu1 %v5400_v24 }
 0x1ba   :  { %3037 = vmatpush1.bf16.msra.mxu0 %v5320_v27  ;;  %v5376_v27 = vld [vmem:[#allocation2 + $0xbbc] ss:$12 sps:$4 sm:$0xff]  }
 0x1bb   :  { %3038 = vmatprep.subr.bf16.mxu0 %v5325_v28  ;;  %v5398_v28 = vld [vmem:[#allocation7 + $0x78] ss:$12 sps:$4 sm:$0xff]  }
 0x1bc   :  { %3930 = vmatpush1.bf16.msra.mxu1 %v5398_v28 }
 0x1be   :  { %3039 = vmatpush1.bf16.msra.mxu0 %v5323_v29  ;;  %v5403_v29 = vld [vmem:[#allocation7 + $0x94] ss:$12 sps:$4 sm:$0xff]  }
 0x1bf   :  { %3040 = vmatprep.subr.bf16.mxu0 %v5328_v30  ;;  %v4656_v32 = vpop.f32.mrb[12].mxu1  ;;  %v5374_v30 = vld [vmem:[#allocation2 + $0xbb8] ss:$12 sps:$4 sm:$0xff]   ;;  %3931 = vmatprep.subr.bf16.mxu1 %v5403_v29 }
 0x1c0   :  { %v4657_v34 = vpop.f32.mrb[13].mxu1 }
 0x1c1   :  { %v4658_v18 = vadd.f32 %v4657_v34, %v4656_v32  ;;  %v4659_v37 = vpop.f32.mrb[14].mxu1  ;;  %v5406_v34 = vld [vmem:[#allocation7 + $0xac] ss:$12 sps:$4 sm:$0xff]  }
 0x1c2   :  { %3041 = vmatpush1.bf16.msra.mxu0 %v5326_v31  ;;  %v4660_v20 = vpop.f32.mrb[15].mxu1  ;;  %v5379_v31 = vld [vmem:[#allocation2 + $0xbd4] ss:$12 sps:$4 sm:$0xff]  }
 0x1c3   :  { %3042 = vmatprep.subr.bf16.mxu0 %v5331_v10  ;;  %v3211_v25 = vadd.f32 %v4658_v18, %v3171_v14  ;;  %v5365_v14 = vld [vmem:[#allocation2 + $0xb70] ss:$12 sps:$4 sm:$0xff]   ;;  %v5401_v10 = vld [vmem:[#allocation7 + $0x90] ss:$12 sps:$4 sm:$0xff]   ;;  %v5382_v20 = vld [vmem:[#allocation2 + $0xbec] ss:$12 sps:$4 sm:$0xff]  }
 0x1c4   :  { %v5377_v18 = vld [vmem:[#allocation2 + $0xbd0] ss:$12 sps:$4 sm:$0xff]   ;;  %3932 = vmatpush1.bf16.msra.mxu1 %v5401_v10 }
 0x1c5   :  { %3933 = vmatprep.subr.bf16.mxu1 %v5406_v34 }
 0x1c6   :  { %3043 = vmatpush1.bf16.msra.mxu0 %v5329_v36 }
 0x1c7   :  { %3044 = vmatprep.subr.bf16.mxu0 %v5334_v38 }
 0x1ca   :  { %3045 = vmatpush1.bf16.msra.mxu0 %v5332_v40  ;;  %v5404_v40 = vld [vmem:[#allocation7 + $0xa8] ss:$12 sps:$4 sm:$0xff]  }
 0x1cb   :  { %3055 = vmatprep.subr.bf16.mxu0 %v5337_v22  ;;  %3934 = vmatpush1.bf16.msra.mxu1 %v5404_v40  ;;  %v5445_v40 = vld [vmem:[#allocation7 + $0x1e4] ss:$12 sps:$4 sm:$0xff]  }
 0x1cd   :  { %3047 = vmatmul.mubr.bf16.vlgmr.msra.gmra.mrb[0].mxu0 %v5801_v9  ;;  %v5350_v9 = vld [vmem:[#allocation2 + $0xaf8] ss:$12 sps:$4 sm:$0xff]  }
 0x1ce   :  { %3056 = vmatpush1.bf16.msra.mxu0 %v5335_v41  ;;  %3087 = vmatprep.mubr.bf16.mxu0 %v5805_v17  ;;  %v5409_v41 = vld [vmem:[#allocation7 + $0xc4] ss:$12 sps:$4 sm:$0xff]  }
 0x1cf   :  { %3057 = vmatprep.subr.bf16.mxu0 %v5340_v44  ;;  %v5380_v44 = vld [vmem:[#allocation2 + $0xbe8] ss:$12 sps:$4 sm:$0xff]   ;;  %3935 = vmatprep.subr.bf16.mxu1 %v5409_v41  ;;  %v5448_v41 = vld [vmem:[#allocation7 + $0x1fc] ss:$12 sps:$4 sm:$0xff]  }
 0x1d2   :  { %3058 = vmatpush1.bf16.msra.mxu0 %v5338_v45  ;;  %v5407_v45 = vld [vmem:[#allocation7 + $0xc0] ss:$12 sps:$4 sm:$0xff]  }
 0x1d3   :  { %3059 = vmatprep.subr.bf16.mxu0 %v5343_v46  ;;  %v5412_v46 = vld [vmem:[#allocation7 + $0xdc] ss:$12 sps:$4 sm:$0xff]   ;;  %3936 = vmatpush1.bf16.msra.mxu1 %v5407_v45  ;;  %v5451_v45 = vld [vmem:[#allocation7 + $0x214] ss:$12 sps:$4 sm:$0xff]  }
 0x1d4   :  { %3937 = vmatprep.subr.bf16.mxu1 %v5412_v46  ;;  %v5449_v46 = vld [vmem:[#allocation7 + $0x210] ss:$12 sps:$4 sm:$0xff]  }
 0x1d6   :  { %3060 = vmatpush1.bf16.msra.mxu0 %v5341_v47  ;;  %v5410_v47 = vld [vmem:[#allocation7 + $0xd8] ss:$12 sps:$4 sm:$0xff]  }
 0x1d7   :  { %3061 = vmatprep.subr.bf16.mxu0 %v5346_v48  ;;  %v5415_v48 = vld [vmem:[#allocation7 + $0xf4] ss:$12 sps:$4 sm:$0xff]   ;;  %3938 = vmatpush1.bf16.msra.mxu1 %v5410_v47  ;;  %v5454_v47 = vld [vmem:[#allocation7 + $0x22c] ss:$12 sps:$4 sm:$0xff]  }
 0x1d8   :  { %3939 = vmatprep.subr.bf16.mxu1 %v5415_v48  ;;  %v5452_v48 = vld [vmem:[#allocation7 + $0x228] ss:$12 sps:$4 sm:$0xff]  }
 0x1da   :  { %3062 = vmatpush1.bf16.msra.mxu0 %v5344_v51  ;;  %v5413_v51 = vld [vmem:[#allocation7 + $0xf0] ss:$12 sps:$4 sm:$0xff]  }
 0x1db   :  { %3063 = vmatprep.subr.bf16.mxu0 %v5349_v52  ;;  %v5418_v52 = vld [vmem:[#allocation7 + $0x10c] ss:$12 sps:$4 sm:$0xff]   ;;  %3940 = vmatpush1.bf16.msra.mxu1 %v5413_v51 }
 0x1dc   :  { %3941 = vmatprep.subr.bf16.mxu1 %v5418_v52  ;;  %v5455_v52 = vld [vmem:[#allocation7 + $0xc8] ss:$12 sps:$4 sm:$0xff]  }
 0x1de   :  { %3064 = vmatpush1.bf16.msra.mxu0 %v5347_v53  ;;  %v5416_v53 = vld [vmem:[#allocation7 + $0x108] ss:$12 sps:$4 sm:$0xff]  }
 0x1df   :  { %3065 = vmatprep.subr.bf16.mxu0 %v5352_v54  ;;  %v4678_v56 = vpop.f32.mrb[16].mxu1  ;;  %v5421_v54 = vld [vmem:[#allocation7 + $0x124] ss:$12 sps:$4 sm:$0xff]   ;;  %3942 = vmatpush1.bf16.msra.mxu1 %v5416_v53  ;;  %v5456_v53 = vld [vmem:[#allocation7 + $0x8] ss:$12 sps:$4 sm:$0xff]  }
 0x1e0   :  { %v4679_v17 = vpop.f32.mrb[17].mxu1  ;;  %3943 = vmatprep.subr.bf16.mxu1 %v5421_v54 }
 0x1e1   :  { %v4680_v58 = vadd.f32 %v4679_v17, %v4678_v56  ;;  %v4681_v59 = vpop.f32.mrb[18].mxu1  ;;  %v5422_v56 = vld [vmem:[#allocation7 + $0x138] ss:$12 sps:$4 sm:$0xff]  }
 0x1e2   :  { %3066 = vmatpush1.bf16.msra.mxu0 %v5350_v9  ;;  %v4682_v61 = vpop.f32.mrb[19].mxu1  ;;  %v5419_v9 = vld [vmem:[#allocation7 + $0x120] ss:$12 sps:$4 sm:$0xff]  }
 0x1e3   :  { %3067 = vmatprep.subr.bf16.mxu0 %v5355_v55  ;;  %v5828_v62 = vadd.f32 %v4680_v58, %v3211_v25  ;;  %v5424_v55 = vld [vmem:[#allocation7 + $0x13c] ss:$12 sps:$4 sm:$0xff]   ;;  %3944 = vmatpush1.bf16.msra.mxu1 %v5419_v9  ;;  %v5457_v9 = vld [vmem:[#allocation7 + $0xe0] ss:$12 sps:$4 sm:$0xff]  }
 0x1e4   :  { %3945 = vmatprep.subr.bf16.mxu1 %v5424_v55  ;;  %v5458_v55 = vld [vmem:[#allocation7 + $0x20] ss:$12 sps:$4 sm:$0xff]  }
 0x1e6   :  { %3068 = vmatpush1.bf16.msra.mxu0 %v5353_v57 }
 0x1e7   :  { %3069 = vmatprep.subr.bf16.mxu0 %v5358_v60  ;;  %3946 = vmatpush1.bf16.msra.mxu1 %v5422_v56  ;;  %v5459_v56 = vld [vmem:[#allocation7 + $0xf8] ss:$12 sps:$4 sm:$0xff]  }
 0x1e8   :  { %3947 = vmatprep.subr.bf16.mxu1 %v5427_v4  ;;  %v5617_v4 = vmov 0.0  }
 0x1ea   :  { %3070 = vmatpush1.bf16.msra.mxu0 %v5356_v63 }
 0x1eb   :  { %3071 = vmatprep.subr.bf16.mxu0 %v5361_v1 }
 0x1ee   :  { %3072 = vmatpush1.bf16.msra.mxu0 %v5359_v5  ;;  %v5425_v5 = vld [vmem:[#allocation7 + $0x150] ss:$12 sps:$4 sm:$0xff]  }
 0x1ef   :  { %3073 = vmatprep.subr.bf16.mxu0 %v5364_v6  ;;  %3948 = vmatpush1.bf16.msra.mxu1 %v5425_v5  ;;  %v5472_v5 = vld [vmem:[#allocation7 + $0x1a0] ss:$12 sps:$4 sm:$0xff]  }
 0x1f2   :  { %3074 = vmatpush1.bf16.msra.mxu0 %v5362_v8  ;;  %v5430_v8 = vld [vmem:[#allocation7 + $0x16c] ss:$12 sps:$4 sm:$0xff]  }
 0x1f3   :  { %3075 = vmatprep.subr.bf16.mxu0 %v5367_v11  ;;  %3949 = vmatprep.subr.bf16.mxu1 %v5430_v8  ;;  %v5476_v8 = vld [vmem:[#allocation7 + $0x200] ss:$12 sps:$4 sm:$0xff]  }
 0x1f4   :  { %3950 = vmatpush1.bf16.msra.mxu1 %v5428_v12  ;;  %v5478_v12 = vld [vmem:[#allocation7 + $0x230] ss:$12 sps:$4 sm:$0xff]  }
 0x1f6   :  { %3076 = vmatpush1.bf16.msra.mxu0 %v5365_v14 }
 0x1f7   :  { %3077 = vmatprep.subr.bf16.mxu0 %v5370_v15  ;;  %v5433_v15 = vld [vmem:[#allocation7 + $0x184] ss:$12 sps:$4 sm:$0xff]  }
 0x1f8   :  { %3960 = vmatprep.subr.bf16.mxu1 %v5433_v15 }
 0x1fa   :  { %3078 = vmatpush1.bf16.msra.mxu0 %v5368_v19  ;;  %v592_v19 = vrot.slane %v5821_v43, %v591_v16 }
 0x1fb   :  { %3079 = vmatprep.subr.bf16.mxu0 %v5373_v21  ;;  %v596_v21 = vrot.slane %v5821_v43, %v595_v49  ;;  %v5616_v43 = vmov 0  }
 0x1fc   :  { %v2803_v23 = vadd.f32 %v5809_v33, %v592_v19  ;;  %v5434_v33 = vld [vmem:[#allocation7 + $0x198] ss:$12 sps:$4 sm:$0xff]  }
 0x1fd   :  { %v2805_v24 = vadd.f32 %v5811_v35, %v596_v21  ;;  %v5439_v35 = vld [vmem:[#allocation7 + $0x1b4] ss:$12 sps:$4 sm:$0xff]  }
 0x1fe   :  { %3080 = vmatpush1.bf16.msra.mxu0 %v5371_v26 }
 0x1ff   :  { %3081 = vmatprep.subr.bf16.mxu0 %v5376_v27  ;;  %v4700_v32 = vpop.f32.mrb[20].mxu1 }
 0x200   :  { %v4701_v36 = vpop.f32.mrb[21].mxu1 }
 0x201   :  { %v4702_v37 = vadd.f32 %v4701_v36, %v4700_v32  ;;  %v4703_v38 = vpop.f32.mrb[22].mxu1  ;;  %v5431_v36 = vld [vmem:[#allocation7 + $0x180] ss:$12 sps:$4 sm:$0xff]  }
 0x202   :  { %3082 = vmatpush1.bf16.msra.mxu0 %v5374_v30  ;;  %v4704_v25 = vpop.f32.mrb[23].mxu1  ;;  %v5437_v38 = vld [vmem:[#allocation7 + $0x1b0] ss:$12 sps:$4 sm:$0xff]  }
 0x203   :  { %3083 = vmatprep.subr.bf16.mxu0 %v5379_v31  ;;  %v3291_v22 = vadd.f32 %v4702_v37, %v5828_v62  ;;  %v5436_v37 = vld [vmem:[#allocation7 + $0x19c] ss:$12 sps:$4 sm:$0xff]  }
 0x204   :  { %v5440_v25 = vld [vmem:[#allocation7 + $0x1c8] ss:$12 sps:$4 sm:$0xff]  }
 0x206   :  { %3084 = vmatpush1.bf16.msra.mxu0 %v5377_v18 }
 0x207   :  { %3085 = vmatprep.subr.bf16.mxu0 %v5382_v20  ;;  %v5442_v20 = vld [vmem:[#allocation7 + $0x1cc] ss:$12 sps:$4 sm:$0xff]  }
 0x20a   :  { %3086 = vmatpush1.bf16.msra.mxu0 %v5380_v44  ;;  %v5446_v44 = vld [vmem:[#allocation7 + $0x1f8] ss:$12 sps:$4 sm:$0xff]  }
 0x20d   :  { %3088 = vmatmul.mubr.bf16.vlgmr.msra.gmra.mrb[0].mxu0 %v5815_v50 }
 0x21f   :  { %v4722_v17 = vpop.f32.mrb[24].mxu1 }
 0x220   :  { %v4723_v57 = vpop.f32.mrb[25].mxu1 }
 0x221   :  { %v4724_v58 = vadd.f32 %v4723_v57, %v4722_v17  ;;  %v4725_v50 = vpop.f32.mrb[26].mxu1  ;;  %v5460_v17 = vld [vmem:[#allocation7 + $0x38] ss:$12 sps:$4 sm:$0xff]   ;;  %v5461_v57 = vld [vmem:[#allocation7 + $0x110] ss:$12 sps:$4 sm:$0xff]  }
 0x222   :  { %v4726_v59 = vpop.f32.mrb[27].mxu1  ;;  %v5463_v50 = vld [vmem:[#allocation7 + $0x128] ss:$12 sps:$4 sm:$0xff]  }
 0x223   :  { %v3331_v60 = vadd.f32 %v4724_v58, %v3291_v22  ;;  %v5443_v22 = vld [vmem:[#allocation7 + $0x1e0] ss:$12 sps:$4 sm:$0xff]   ;;  %v5462_v58 = vld [vmem:[#allocation7 + $0x50] ss:$12 sps:$4 sm:$0xff]   ;;  %v5464_v59 = vld [vmem:[#allocation7 + $0x68] ss:$12 sps:$4 sm:$0xff]  }
 0x23f   :  { %v4744_v61 = vpop.f32.mrb[28].mxu1 }
 0x240   :  { %v4745_v62 = vpop.f32.mrb[29].mxu1 }
 0x241   :  { %v4746_v63 = vadd.f32 %v4745_v62, %v4744_v61  ;;  %v4747_v1 = vpop.f32.mrb[30].mxu1  ;;  %v5466_v61 = vld [vmem:[#allocation7 + $0x80] ss:$12 sps:$4 sm:$0xff]   ;;  %v5467_v62 = vld [vmem:[#allocation7 + $0x158] ss:$12 sps:$4 sm:$0xff]  }
 0x242   :  { %v4748_v2 = vpop.f32.mrb[31].mxu1  ;;  %v5469_v1 = vld [vmem:[#allocation7 + $0x170] ss:$12 sps:$4 sm:$0xff]  }
 0x243   :  { %v3371_v3 = vadd.f32 %v4746_v63, %v3331_v60  ;;  %v5465_v60 = vld [vmem:[#allocation7 + $0x140] ss:$12 sps:$4 sm:$0xff]   ;;  %v5468_v63 = vld [vmem:[#allocation7 + $0x98] ss:$12 sps:$4 sm:$0xff]   ;;  %v5470_v2 = vld [vmem:[#allocation7 + $0xb0] ss:$12 sps:$4 sm:$0xff]  }
 0x25f   :  { %v4766_v6 = vpop.f32.mrb[32].mxu1 }
 0x260   :  { %v4767_v7 = vpop.f32.mrb[33].mxu1 }
 0x261   :  { %v4768_v0 = vadd.f32 %v4767_v7, %v4766_v6  ;;  %v4769_v11 = vpop.f32.mrb[34].mxu1  ;;  %v5473_v6 = vld [vmem:[#allocation7 + $0x1b8] ss:$12 sps:$4 sm:$0xff]   ;;  %v5474_v7 = vld [vmem:[#allocation7 + $0x1d0] ss:$12 sps:$4 sm:$0xff]  }
 0x262   :  { %v4770_v13 = vpop.f32.mrb[35].mxu1  ;;  %v5477_v11 = vld [vmem:[#allocation7 + $0x218] ss:$12 sps:$4 sm:$0xff]  }
 0x263   :  { %v3411_v14 = vadd.f32 %v4768_v0, %v3371_v3  ;;  %v5471_v3 = vld [vmem:[#allocation7 + $0x188] ss:$12 sps:$4 sm:$0xff]   ;;  %v3518_v13 = vld [vmem:[#allocation8] sm:$0x7] }
 0x264   :  { %v5475_v0 = vld [vmem:[#allocation7 + $0x1e8] ss:$12 sps:$4 sm:$0xff]   ;;  %v3527_v15 = vrot.slane %v3518_v13, %v595_v49 }
 0x265   :  { %v3418_v51 = vmax.f32 %v3411_v14, 0.0  ;;  %v3523_v14 = vrot.slane %v3518_v13, %v591_v16 }
 0x267   :  { %v3421_v54 = vpack.c.bf16 %v3418_v51, %v3418_v51 }
 0x2e0   :  { %v3089_v26 = vpop.f32.mrb[0].mxu0 }
 0x2e1   :  { %v4824_v27 = vadd.f32 %v3089_v26, %v2803_v23  ;;  %v3091_v28 = vpop.f32.mrb[1].mxu0 }
 0x2e2   :  { %v4826_v29 = vadd.f32 %v3091_v28, %v2805_v24  ;;  %v3093_v30 = vpop.f32.mrb[2].mxu0 }
 0x2e3   :  { %v3416_v31 = vmax.f32 %v4824_v27, 0.0  ;;  %v3094_v10 = vpop.f32.mrb[3].mxu0 }
 0x2e4   :  { %v3417_v32 = vmax.f32 %v4826_v29, 0.0 }
 0x2e5   :  { %v5842_v18 = vpack.c.bf16 %v3416_v31, %v3416_v31 }
 0x2e6   :  { %v3420_v34 = vpack.c.bf16 %v3417_v32, %v3417_v32 }
 0x2e8   :  { %3951 = vmatprep.mubr.bf16.mxu1 %v3420_v34 }
 0x2e9   :  { %3952 = vmatmul.mubr.bf16.vlgmr.msra.gmra.mrb[36].mxu1 %v5842_v18 }
 0x2ea   :  { %3961 = vmatpush1.bf16.msra.mxu1 %v5431_v36  ;;  %3992 = vmatprep.mubr.bf16.mxu1 %v5616_v43 }
 0x2eb   :  { %3962 = vmatprep.subr.bf16.mxu1 %v5436_v37 }
 0x2ee   :  { %3963 = vmatpush1.bf16.msra.mxu1 %v5434_v33 }
 0x2ef   :  { %3964 = vmatprep.subr.bf16.mxu1 %v5439_v35  ;;  %v3531_v35 = vrot.slane %v3518_v13, %v599_v39 }
 0x2f2   :  { %3965 = vmatpush1.bf16.msra.mxu1 %v5437_v38 }
 0x2f3   :  { %3966 = vmatprep.subr.bf16.mxu1 %v5442_v20 }
 0x2f6   :  { %3967 = vmatpush1.bf16.msra.mxu1 %v5440_v25 }
 0x2f7   :  { %3968 = vmatprep.subr.bf16.mxu1 %v5445_v40 }
 0x2fa   :  { %3969 = vmatpush1.bf16.msra.mxu1 %v5443_v22 }
 0x2fb   :  { %3970 = vmatprep.subr.bf16.mxu1 %v5448_v41 }
 0x2fe   :  { %3971 = vmatpush1.bf16.msra.mxu1 %v5446_v44 }
 0x2ff   :  { %3972 = vmatprep.subr.bf16.mxu1 %v5451_v45 }
 0x302   :  { %3973 = vmatpush1.bf16.msra.mxu1 %v5449_v46 }
 0x303   :  { %3974 = vmatprep.subr.bf16.mxu1 %v5454_v47  ;;  %v5619_v47 = vmov 1983009808  }
 0x306   :  { %3975 = vmatpush1.bf16.msra.mxu1 %v5452_v48  ;;  %v4104_v48 = vunpack.c.l.s4 %v5619_v47 }
 0x307   :  { %4772 = vmatprep.subr.bf16.mxu1 %v5455_v52 }
 0x308   :  { %v4105_v51 = vunpack.c.0.s8 %v4104_v48 }
 0x309   :  { %3993 = vmatmul.mubr.bf16.vlgmr.msra.gmra.mrb[36].mxu1 %v3421_v54 }
 0x30a   :  { %4773 = vmatpush3.bf16.msra.mxu1 %v5456_v53  ;;  %4033 = vmatprep.mubr.bf16.mxu1 %v3420_v34  ;;  %v4108_v52 = vsub.s32 %v4105_v51, %v5706_v42 }
 0x30b   :  { %4774 = vmatprep.subr.bf16.mxu1 %v5457_v9 }
 0x30e   :  { %4775 = vmatpush3.bf16.msra.mxu1 %v5458_v55 }
 0x30f   :  { %4776 = vmatprep.subr.bf16.mxu1 %v5459_v56 }
 0x312   :  { %4777 = vmatpush3.bf16.msra.mxu1 %v5460_v17 }
 0x313   :  { %4778 = vmatprep.subr.bf16.mxu1 %v5461_v57 }
 0x316   :  { %4779 = vmatpush3.bf16.msra.mxu1 %v5462_v58 }
 0x317   :  { %4780 = vmatprep.subr.bf16.mxu1 %v5463_v50 }
 0x31a   :  { %4781 = vmatpush3.bf16.msra.mxu1 %v5464_v59 }
 0x31b   :  { %4782 = vmatprep.subr.bf16.mxu1 %v5465_v60 }
 0x31e   :  { %4783 = vmatpush3.bf16.msra.mxu1 %v5466_v61 }
 0x31f   :  { %4784 = vmatprep.subr.bf16.mxu1 %v5467_v62 }
 0x322   :  { %4785 = vmatpush3.bf16.msra.mxu1 %v5468_v63 }
 0x323   :  { %4786 = vmatprep.subr.bf16.mxu1 %v5469_v1 }
 0x326   :  { %4787 = vmatpush3.bf16.msra.mxu1 %v5470_v2 }
 0x327   :  { %4803 = vmatprep.subr.bf16.mxu1 %v5617_v4 }
 0x329   :  { %4034 = vmatmul.mubr.bf16.vlgmr.msra.gmra.mrb[40].mxu1 %v5842_v18 }
 0x32a   :  { %4804 = vmatpush3.bf16.msra.mxu1 %v5471_v3  ;;  %4819 = vmatprep.mubr.msk.bf16.mxu1 %vm5618_vm0, %v5617_v4 }
 0x32b   :  { %4805 = vmatprep.subr.bf16.mxu1 %v5617_v4 }
 0x32e   :  { %4806 = vmatpush3.bf16.msra.mxu1 %v5472_v5 }
 0x32f   :  { %4807 = vmatprep.subr.bf16.mxu1 %v5617_v4 }
 0x332   :  { %4808 = vmatpush3.bf16.msra.mxu1 %v5473_v6 }
 0x333   :  { %4809 = vmatprep.subr.bf16.mxu1 %v5617_v4 }
 0x336   :  { %4810 = vmatpush3.bf16.msra.mxu1 %v5474_v7 }
 0x337   :  { %4811 = vmatprep.subr.bf16.mxu1 %v5617_v4 }
 0x33a   :  { %4812 = vmatpush3.bf16.msra.mxu1 %v5475_v0 }
 0x33b   :  { %4813 = vmatprep.subr.bf16.mxu1 %v5617_v4 }
 0x33e   :  { %4814 = vmatpush3.bf16.msra.mxu1 %v5476_v8 }
 0x33f   :  { %4815 = vmatprep.subr.bf16.mxu1 %v5617_v4 }
 0x342   :  { %4816 = vmatpush3.bf16.msra.mxu1 %v5477_v11 }
 0x343   :  { %4817 = vmatprep.subr.bf16.mxu1 %v5617_v4 }
 0x346   :  { %4818 = vmatpush3.bf16.msra.mxu1 %v5478_v12 }
 0x349   :  { %4820 = vmatmul.mubr.bf16.vlgmr.msra.gmra.mrb[44].mxu1 %v3421_v54 }
 0x3dc   :  { %v3994_v19 = vpop.f32.mrb[36].mxu1 }
 0x3dd   :  { %v4827_v21 = vadd.f32 %v3994_v19, %v3523_v14  ;;  %v3996_v23 = vpop.f32.mrb[37].mxu1 }
 0x3de   :  { %v4828_v24 = vadd.f32 %v3996_v23, %v3527_v15  ;;  %v3998_v26 = vpop.f32.mrb[38].mxu1 }
 0x3df   :  { %v4593_v27 = vmul.f32 -1.442695, %v4827_v21  ;;  %v3999_v28 = vpop.f32.mrb[39].mxu1 }
 0x3e0   :  { %v4594_v29 = vmul.f32 -1.442695, %v4828_v24 }
 0x3e1   :  { %5479 = vpow2.f32 %v4593_v27 }
 0x3e2   :  { %5481 = vpow2.f32 %v4594_v29 }
 0x3eb   :  { %v5480_v30 = vpop.eup %5479 }
 0x3ec   :  { %v5482_v31 = vpop.eup %5481  ;;  %v4090_v10 = vadd.f32 1.0, %v5480_v30 }
 0x3ed   :  { %v4091_v32 = vadd.f32 1.0, %v5482_v31 }
 0x3ee   :  { %5483 = vrcp.f32 %v4090_v10 }
 0x3ef   :  { %5485 = vrcp.f32 %v4091_v32 }
 0x3f8   :  { %v5484_v16 = vpop.eup %5483 }
 0x3f9   :  { %v5486_v34 = vpop.eup %5485 }
 0x3fa   :  { %v4102_v36 = vcombine.low %v5484_v16, %v5486_v34 }
 0x3fc   :  { %v4788_v49 = vpop.f32.mrb[40].mxu1  ;;  %v4109_v39 = vrot.slane %v4102_v36, %v4108_v52 }
 0x3fd   :  { %v4789_v18 = vpop.f32.mrb[41].mxu1 }
 0x3fe   :  { %v4790_v37 = vadd.f32 %v4789_v18, %v4788_v49  ;;  %v4791_v33 = vpop.f32.mrb[42].mxu1 }
 0x3ff   :  { %v4792_v43 = vpop.f32.mrb[43].mxu1 }
 0x400   :  { %v4036_v38 = vadd.f32 %v4790_v37, %v3531_v35 }
 0x41c   :  { %v4075_v20 = vpop.f32.mrb[44].mxu1 }
 0x41d   :  { %v4076_v25 = vadd.f32 %v4075_v20, %v4036_v38  ;;  %v4821_v40 = vpop.f32.mrb[45].mxu1 }
 0x41e   :  { %v4078_v22 = vpop.f32.mrb[46].mxu1 }
 0x41f   :  { %v4595_v41 = vmul.f32 -1.442695, %v4076_v25  ;;  %v4822_v44 = vpop.f32.mrb[47].mxu1 }
 0x421   :  { %5487 = vpow2.f32 %v4595_v41 }
 0x42b   :  { %v5488_v45 = vpop.eup %5487 }
 0x42c   :  { %v4092_v46 = vadd.f32 1.0, %v5488_v45 }
 0x42e   :  { %5489 = vrcp.f32 %v4092_v46 }
 0x438   :  { %v5490_v53 = vpop.eup %5489 }
 0x439   :  { %v4116_v54 = vrot.slane %v5490_v53, %v4108_v52 }
 0x43b   :  { %v4117_v9 = vcombine.low %v4109_v39, %v4116_v54 }
 0x43d   :  { %4119 = vst [vmem:[#allocation10] sm:$0x3f] %v4117_v9 }
 0x43e   :  { %5590 = shalt.err (!%p5587_p8)
}
 0x43f   :  { %s5591_s24 = scalar_lea.hbm %s5870_s5, 96 }
 0x440   :  { %p5592_p9 = scmp.ne.s32.totalorder %s5870_s5, %s5591_s24  ;;  %p5595_p10 = scmp.lt.u32.totalorder %s5591_s24, %s5870_s5 }
 0x442   :  { %p5597_p11 = pnand %p5595_p10, %p5592_p9 }
 0x444   :  { %5600 = shalt.err (!%p5597_p11)
}
 0x445   :  { %4129 = dma.vmem_to_hbm [thread:$0]  %s4127_s19, 96, %s5870_s5, [#allocation4]  }
 0x446   :  { %5607 = dma.done.wait [#allocation4], 96  }
 0x447   :  { %5608 = vsyncadd [#allocation4], 4294967200 }
 0x448   :  { %4133 = vsyncpa [#allocation3], 1 }
 0x449   :  { %4134 = vsyncpa [#allocation6], 1 }
 0x44a   :  { %4135 = vsyncpa [#allocation9], 1 }
 0x44b   :  { %4136 = vsyncpa [#allocation4], 1 }

</bundles_post_ra>
